<compile_context>
chip_gen: v5e
topology: v5e:2x2
jax: 0.10.0
libtpu: 0.0.40
codegen_flags: <defaults>
</compile_context>

<pallas_src>
import functools

import jax
import jax.numpy as jnp
from jax.experimental import pallas as pl
from jax.experimental.pallas import tpu as pltpu

# ----------------------------- scaled-down BERT config -----------------------------
B = 2            # batch
S = 16           # sequence length
H = 128          # hidden size        (bert-base: 768)
NHEADS = 4       # attention heads    (bert-base: 12)
DH = H // NHEADS # head dim
INTER = 256      # intermediate size  (bert-base: 3072)
NLAYERS = 2      # encoder layers     (bert-base: 12)
VOCAB = 512
MAXPOS = 64
NUM_LABELS = 3
LN_EPS = 1e-12


# ----------------------------- in-kernel helpers -----------------------------
def _ln(x, g, b, eps):
    """LayerNorm over the last (hidden) axis; x, g, b in f32."""
    mu = jnp.mean(x, axis=-1, keepdims=True)
    d = x - mu
    var = jnp.mean(d * d, axis=-1, keepdims=True)
    return d * jax.lax.rsqrt(var + eps) * g + b


def _gelu(x):
    # TODO(synk): HF bert-base uses exact erf-GELU; tanh approximation used here.
    return 0.5 * x * (1.0 + jnp.tanh(0.7978845608028654 * (x + 0.044715 * x * x * x)))


# ----------------------------- embedding LayerNorm kernel -----------------------------
def _emb_ln_kernel(x_ref, g_ref, b_ref, o_ref, *, eps):
    x = x_ref[...].astype(jnp.float32)
    o_ref[...] = _ln(x, g_ref[...], b_ref[...], eps).astype(o_ref.dtype)


def embed_layernorm(emb, gamma, beta):
    M, Hd = emb.shape
    kern = functools.partial(_emb_ln_kernel, eps=LN_EPS)
    return pl.pallas_call(
        kern,
        out_shape=jax.ShapeDtypeStruct((M, Hd), jnp.float32),
        grid_spec=pltpu.PrefetchScalarGridSpec(
            num_scalar_prefetch=0,
            grid=(1,),
            in_specs=[
                pl.BlockSpec((M, Hd), lambda i: (0, 0)),
                pl.BlockSpec((1, Hd), lambda i: (0, 0)),
                pl.BlockSpec((1, Hd), lambda i: (0, 0)),
            ],
            out_specs=pl.BlockSpec((M, Hd), lambda i: (0, 0)),
        ),
        compiler_params=pltpu.CompilerParams(dimension_semantics=("arbitrary",)),
    )(emb, gamma.reshape(1, Hd), beta.reshape(1, Hd))


# ----------------------------- fused encoder-layer kernel -----------------------------
def _encoder_layer_kernel(x_ref, bias_ref,
                          wqkv_ref, bqkv_ref, wo_ref, bo_ref,
                          ln1g_ref, ln1b_ref, w1_ref, b1_ref,
                          w2_ref, b2_ref, ln2g_ref, ln2b_ref,
                          y_ref, probs_ref, *, scale, eps):
    x = x_ref[...].astype(jnp.float32)          # (S, H)  residual path in f32
    xb = x.astype(jnp.bfloat16)                 # MXU input
    bias = bias_ref[...]                        # (1, S) additive mask (broadcast over rows)

    # --- self-attention: per-head Q/K/V projections, softmax, context, output proj ---
    acc = jnp.zeros((S, H), jnp.float32)        # accumulates ctx @ Wo over heads
    for h in range(NHEADS):                     # unrolled; only leading-axis ref indexing
        qh = jnp.dot(xb, wqkv_ref[h], preferred_element_type=jnp.float32) + bqkv_ref[h]
        kh = jnp.dot(xb, wqkv_ref[NHEADS + h], preferred_element_type=jnp.float32) \
            + bqkv_ref[NHEADS + h]
        vh = jnp.dot(xb, wqkv_ref[2 * NHEADS + h], preferred_element_type=jnp.float32) \
            + bqkv_ref[2 * NHEADS + h]

        s = jnp.dot(qh, kh.T, preferred_element_type=jnp.float32) * scale + bias  # (S, S)
        m = jnp.max(s, axis=-1, keepdims=True)
        e = jnp.exp(s - m)
        p = e * pl.reciprocal(jnp.sum(e, axis=-1, keepdims=True), approx=True)
        probs_ref[h] = p.astype(probs_ref.dtype)                       # attention probs out
        ctx_h = jnp.dot(p, vh, preferred_element_type=jnp.float32)     # (S, DH)
        acc = acc + jnp.dot(ctx_h.astype(jnp.bfloat16), wo_ref[h],
                            preferred_element_type=jnp.float32)        # (S, H)

    attn_out = acc + bo_ref[...]
    # dropout(0.1): identity in eval mode.
    x1 = _ln(attn_out + x, ln1g_ref[...], ln1b_ref[...], eps)          # residual + LN1

    # --- feed-forward ---
    h1 = jnp.dot(x1.astype(jnp.bfloat16), w1_ref[...],
                 preferred_element_type=jnp.float32) + b1_ref[...]     # (S, INTER)
    h1 = _gelu(h1)
    ffn = jnp.dot(h1.astype(jnp.bfloat16), w2_ref[...],
                  preferred_element_type=jnp.float32) + b2_ref[...]    # (S, H)
    # dropout(0.1): identity in eval mode.
    y_ref[...] = _ln(ffn + x1, ln2g_ref[...], ln2b_ref[...], eps).astype(y_ref.dtype)


def encoder_layer(x, mask_bias, lp):
    """x: (B*S, H) f32; mask_bias: (B, 1, S) f32. Returns (new_x, attn_probs)."""
    kern = functools.partial(_encoder_layer_kernel, scale=1.0 / (DH ** 0.5), eps=LN_EPS)
    y, probs = pl.pallas_call(
        kern,
        out_shape=(
            jax.ShapeDtypeStruct((B * S, H), jnp.float32),
            jax.ShapeDtypeStruct((B, NHEADS, S, S), jnp.float32),
        ),
        grid_spec=pltpu.PrefetchScalarGridSpec(
            num_scalar_prefetch=0,
            grid=(B,),
            in_specs=[
                pl.BlockSpec((S, H), lambda b: (b, 0)),                       # x (per batch)
                pl.BlockSpec((None, 1, S), lambda b: (b, 0, 0)),              # mask bias
                pl.BlockSpec((3 * NHEADS, H, DH), lambda b: (0, 0, 0)),       # wqkv (bf16)
                pl.BlockSpec((3 * NHEADS, 1, DH), lambda b: (0, 0, 0)),       # bqkv
                pl.BlockSpec((NHEADS, DH, H), lambda b: (0, 0, 0)),           # wo (bf16)
                pl.BlockSpec((1, H), lambda b: (0, 0)),                       # bo
                pl.BlockSpec((1, H), lambda b: (0, 0)),                       # ln1 gamma
                pl.BlockSpec((1, H), lambda b: (0, 0)),                       # ln1 beta
                pl.BlockSpec((H, INTER), lambda b: (0, 0)),                   # w1 (bf16)
                pl.BlockSpec((1, INTER), lambda b: (0, 0)),                   # b1
                pl.BlockSpec((INTER, H), lambda b: (0, 0)),                   # w2 (bf16)
                pl.BlockSpec((1, H), lambda b: (0, 0)),                       # b2
                pl.BlockSpec((1, H), lambda b: (0, 0)),                       # ln2 gamma
                pl.BlockSpec((1, H), lambda b: (0, 0)),                       # ln2 beta
            ],
            out_specs=[
                pl.BlockSpec((S, H), lambda b: (b, 0)),                       # new x
                pl.BlockSpec((None, NHEADS, S, S), lambda b: (b, 0, 0, 0)),   # attn probs
            ],
        ),
        compiler_params=pltpu.CompilerParams(dimension_semantics=("parallel",)),
    )(x, mask_bias,
      lp["wqkv"], lp["bqkv"],
      lp["wo"], lp["bo"].reshape(1, H),
      lp["ln1_g"].reshape(1, H), lp["ln1_b"].reshape(1, H),
      lp["w1"], lp["b1"].reshape(1, INTER),
      lp["w2"], lp["b2"].reshape(1, H),
      lp["ln2_g"].reshape(1, H), lp["ln2_b"].reshape(1, H))
    return y, probs


# ----------------------------- fused pooler + classifier + CE kernel -----------------------------
def _head_kernel(cls_ref, pw_ref, pb_ref, cw_ref, cb_ref, onehot_ref,
                 logits_ref, loss_ref):
    pooled = jnp.tanh(jnp.dot(cls_ref[...], pw_ref[...],
                              preferred_element_type=jnp.float32) + pb_ref[...])
    # dropout(0.1) on pooled output: identity in eval mode.
    z = jnp.dot(pooled, cw_ref[...], preferred_element_type=jnp.float32) + cb_ref[...]
    logits_ref[...] = z.astype(logits_ref.dtype)
    m = jnp.max(z, axis=-1, keepdims=True)
    lse = jnp.log(jnp.sum(jnp.exp(z - m), axis=-1, keepdims=True)) + m
    nll = lse - jnp.sum(onehot_ref[...] * z, axis=-1, keepdims=True)   # (B, 1)
    loss_ref[...] = jnp.mean(nll, axis=0, keepdims=True)               # (1, 1)


def pooler_classifier_loss(cls_tok, pool_w, pool_b, cls_w, cls_b, onehot):
    Bc, Hd = cls_tok.shape
    L = cls_w.shape[1]
    logits, loss = pl.pallas_call(
        _head_kernel,
        out_shape=(jax.ShapeDtypeStruct((Bc, L), jnp.float32),
                   jax.ShapeDtypeStruct((1, 1), jnp.float32)),
        grid_spec=pltpu.PrefetchScalarGridSpec(
            num_scalar_prefetch=0,
            grid=(1,),
            in_specs=[
                pl.BlockSpec((Bc, Hd), lambda i: (0, 0)),
                pl.BlockSpec((Hd, Hd), lambda i: (0, 0)),
                pl.BlockSpec((1, Hd), lambda i: (0, 0)),
                pl.BlockSpec((Hd, L), lambda i: (0, 0)),
                pl.BlockSpec((1, L), lambda i: (0, 0)),
                pl.BlockSpec((Bc, L), lambda i: (0, 0)),
            ],
            out_specs=[
                pl.BlockSpec((Bc, L), lambda i: (0, 0)),
                pl.BlockSpec((1, 1), lambda i: (0, 0)),
            ],
        ),
        compiler_params=pltpu.CompilerParams(dimension_semantics=("arbitrary",)),
    )(cls_tok, pool_w, pool_b.reshape(1, Hd), cls_w, cls_b.reshape(1, L), onehot)
    return logits, loss


# ----------------------------- parameter init -----------------------------
def init_params(key):
    p = {}
    ks = list(jax.random.split(key, 8 + NLAYERS * 16))
    nxt = iter(ks).__next__

    def nrm(shape):
        return jax.random.normal(nxt(), shape, dtype=jnp.float32) * 0.02

    def split_heads_cols(w):   # (H, H) -> (NHEADS, H, DH): head h uses columns h*DH:(h+1)*DH
        return w.reshape(H, NHEADS, DH).transpose(1, 0, 2)

    p["word_emb"] = nrm((VOCAB, H))
    p["pos_emb"] = nrm((MAXPOS, H))
    p["type_emb"] = nrm((2, H))
    p["emb_ln_g"] = jnp.ones((H,), jnp.float32)
    p["emb_ln_b"] = jnp.zeros((H,), jnp.float32)

    p["layers"] = []
    for _ in range(NLAYERS):
        wq, wk, wv = nrm((H, H)), nrm((H, H)), nrm((H, H))
        wo = nrm((H, H))
        lp = {
            # packed per-head Q|K|V weights: (3*NH, H, DH), bf16 (single DMA per layer)
            "wqkv": jnp.concatenate(
                [split_heads_cols(wq), split_heads_cols(wk), split_heads_cols(wv)],
                axis=0).astype(jnp.bfloat16),
            "bqkv": jnp.zeros((3 * NHEADS, 1, DH), jnp.float32),
            # output projection grouped by head rows: (NH, DH, H), bf16
            "wo": wo.reshape(NHEADS, DH, H).astype(jnp.bfloat16),
            "bo": jnp.zeros((H,), jnp.float32),
            "ln1_g": jnp.ones((H,), jnp.float32), "ln1_b": jnp.zeros((H,), jnp.float32),
            "w1": nrm((H, INTER)).astype(jnp.bfloat16),
            "b1": jnp.zeros((INTER,), jnp.float32),
            "w2": nrm((INTER, H)).astype(jnp.bfloat16),
            "b2": jnp.zeros((H,), jnp.float32),
            "ln2_g": jnp.ones((H,), jnp.float32), "ln2_b": jnp.zeros((H,), jnp.float32),
        }
        p["layers"].append(lp)

    p["pool_w"] = nrm((H, H))
    p["pool_b"] = jnp.zeros((H,), jnp.float32)
    p["cls_w"] = nrm((H, NUM_LABELS))
    p["cls_b"] = jnp.zeros((NUM_LABELS,), jnp.float32)
    return p


# ----------------------------- forward pass -----------------------------
def bert_baseline_forward(params, input_ids, attention_mask, labels=None):
    # --- embeddings (gathers are plain-JAX glue; LN is a Pallas kernel; token_type_ids == 0) ---
    word = params["word_emb"][input_ids]                       # (B, S, H)
    pos = params["pos_emb"][jnp.arange(S)]                     # (S, H)
    tok = params["type_emb"][0]                                # (H,)
    emb = (word + pos[None, :, :] + tok[None, None, :]).reshape(B * S, H)
    x = embed_layernorm(emb, params["emb_ln_g"], params["emb_ln_b"])
    # dropout(0.1): identity in eval mode.

    # --- additive attention-mask bias, HF style: (1 - mask) * -10000 ---
    mask_bias = ((1.0 - attention_mask.astype(jnp.float32)) * -10000.0).reshape(B, 1, S)

    all_attentions = []
    for lp in params["layers"]:
        x, probs = encoder_layer(x, mask_bias, lp)             # one fused kernel per layer
        all_attentions.append(probs)                           # (B, NHEADS, S, S)

    last_hidden_state = x.reshape(B, S, H)

    # --- pooler + classifier (+ CE loss), one fused kernel ---
    cls_tok = last_hidden_state[:, 0, :]                       # (B, H)
    if labels is not None:
        onehot = jax.nn.one_hot(labels.reshape(-1), NUM_LABELS, dtype=jnp.float32)
    else:
        onehot = jnp.zeros((B, NUM_LABELS), jnp.float32)
    logits, loss2d = pooler_classifier_loss(
        cls_tok, params["pool_w"], params["pool_b"],
        params["cls_w"], params["cls_b"], onehot)

    loss = loss2d[0, 0] if labels is not None else None
    return loss, logits, last_hidden_state, tuple(all_attentions)


# ----------------------------- main -----------------------------
if __name__ == "__main__":
    key = jax.random.PRNGKey(0)
    k_par, k_ids, k_lab = jax.random.split(key, 3)

    params = init_params(k_par)
    input_ids = jax.random.randint(k_ids, (B, S), 0, VOCAB, dtype=jnp.int32)
    # mask: first batch fully valid, second batch has last 4 tokens padded out
    positions = jnp.arange(S)[None, :]
    valid_len = jnp.array([[S], [S - 4]], dtype=jnp.int32)
    attention_mask = (positions < valid_len).astype(jnp.int32)      # (B, S)
    labels = jax.random.randint(k_lab, (B,), 0, NUM_LABELS, dtype=jnp.int32)

    fwd = jax.jit(bert_baseline_forward)
    loss, logits, last_hidden, attentions = fwd(params, input_ids, attention_mask, labels)

    jax.block_until_ready((loss, logits, last_hidden, attentions))
    assert logits.shape == (B, NUM_LABELS)
    assert last_hidden.shape == (B, S, H)
    assert len(attentions) == NLAYERS and attentions[0].shape == (B, NHEADS, S, S)
    assert loss.shape == ()
    assert bool(jnp.isfinite(loss))
    print("KERNEL_OK")
</pallas_src>

<mosaic_0001>
module attributes {stable_mosaic.version = 11 : i64} {
  func.func @_emb_ln_kernel(%arg0: i32, %arg1: memref<32x128xf32, #tpu.memory_space<vmem>>, %arg2: memref<1x128xf32, #tpu.memory_space<vmem>>, %arg3: memref<1x128xf32, #tpu.memory_space<vmem>>, %arg4: memref<32x128xf32, #tpu.memory_space<vmem>>) attributes {dimension_semantics = [#tpu.dimension_semantics<arbitrary>], iteration_bounds = array<i64: 1>, scalar_prefetch = 0 : i64, scratch_operands = 0 : i64, tpu.core_type = #tpu.core_type<tc>, window_params = [{pipeline_mode = #tpu.pipeline_mode<synchronous>, transform_indices = @transform_0, window_bounds = array<i64: 32, 128>}, {pipeline_mode = #tpu.pipeline_mode<synchronous>, transform_indices = @transform_1, window_bounds = array<i64: 1, 128>}, {pipeline_mode = #tpu.pipeline_mode<synchronous>, transform_indices = @transform_2, window_bounds = array<i64: 1, 128>}, {pipeline_mode = #tpu.pipeline_mode<synchronous>, transform_indices = @transform_3, window_bounds = array<i64: 32, 128>}]} {
    %c0 = arith.constant 0 : index
    %c0_0 = arith.constant 0 : index
    %0 = vector.load %arg1[%c0, %c0_0] : memref<32x128xf32, #tpu.memory_space<vmem>>, vector<32x128xf32>
    %c0_1 = arith.constant 0 : index
    %c0_2 = arith.constant 0 : index
    %1 = vector.load %arg2[%c0_1, %c0_2] : memref<1x128xf32, #tpu.memory_space<vmem>>, vector<1x128xf32>
    %c0_3 = arith.constant 0 : index
    %c0_4 = arith.constant 0 : index
    %2 = vector.load %arg3[%c0_3, %c0_4] : memref<1x128xf32, #tpu.memory_space<vmem>>, vector<1x128xf32>
    %cst = arith.constant dense<0.000000e+00> : vector<32xf32>
    %3 = vector.multi_reduction <add>, %0, %cst [1] : vector<32x128xf32> to vector<32xf32>
    %4 = vector.shape_cast %3 : vector<32xf32> to vector<32x1xf32>
    %cst_5 = arith.constant 1.280000e+02 : f32
    %5 = vector.broadcast %cst_5 : f32 to vector<32x1xf32>
    %6 = arith.divf %4, %5 : vector<32x1xf32>
    %7 = vector.broadcast %6 : vector<32x1xf32> to vector<32x128xf32>
    %8 = arith.subf %0, %7 : vector<32x128xf32>
    %9 = arith.mulf %8, %8 : vector<32x128xf32>
    %cst_6 = arith.constant dense<0.000000e+00> : vector<32xf32>
    %10 = vector.multi_reduction <add>, %9, %cst_6 [1] : vector<32x128xf32> to vector<32xf32>
    %11 = vector.shape_cast %10 : vector<32xf32> to vector<32x1xf32>
    %cst_7 = arith.constant 1.280000e+02 : f32
    %12 = vector.broadcast %cst_7 : f32 to vector<32x1xf32>
    %13 = arith.divf %11, %12 : vector<32x1xf32>
    %cst_8 = arith.constant 9.99999996E-13 : f32
    %14 = vector.broadcast %cst_8 : f32 to vector<32x1xf32>
    %15 = arith.addf %13, %14 : vector<32x1xf32>
    %16 = math.rsqrt %15 : vector<32x1xf32>
    %17 = vector.broadcast %16 : vector<32x1xf32> to vector<32x128xf32>
    %18 = arith.mulf %8, %17 : vector<32x128xf32>
    %19 = vector.broadcast %1 : vector<1x128xf32> to vector<32x128xf32>
    %20 = arith.mulf %18, %19 : vector<32x128xf32>
    %21 = vector.broadcast %2 : vector<1x128xf32> to vector<32x128xf32>
    %22 = arith.addf %20, %21 : vector<32x128xf32>
    %c0_9 = arith.constant 0 : index
    %c0_10 = arith.constant 0 : index
    %23 = vector.load %arg4[%c0_9, %c0_10] : memref<32x128xf32, #tpu.memory_space<vmem>>, vector<32x128xf32>
    tpu.vector_store %arg4[%c0_9, %c0_10], %22 {strides = array<i32>} : memref<32x128xf32, #tpu.memory_space<vmem>>, vector<32x128xf32>,
    return
  }
  func.func @transform_0(%arg0: i32) -> (i32, i32) {
    %c0_i32 = arith.constant 0 : i32
    %c0_i32_0 = arith.constant 0 : i32
    %c0_i32_1 = arith.constant 0 : i32
    return %c0_i32, %c0_i32_0 : i32, i32
  }
  func.func @transform_1(%arg0: i32) -> (i32, i32) {
    %c0_i32 = arith.constant 0 : i32
    %c0_i32_0 = arith.constant 0 : i32
    %c0_i32_1 = arith.constant 0 : i32
    return %c0_i32, %c0_i32_0 : i32, i32
  }
  func.func @transform_2(%arg0: i32) -> (i32, i32) {
    %c0_i32 = arith.constant 0 : i32
    %c0_i32_0 = arith.constant 0 : i32
    %c0_i32_1 = arith.constant 0 : i32
    return %c0_i32, %c0_i32_0 : i32, i32
  }
  func.func @transform_3(%arg0: i32) -> (i32, i32) {
    %c0_i32 = arith.constant 0 : i32
    %c0_i32_0 = arith.constant 0 : i32
    %c0_i32_1 = arith.constant 0 : i32
    return %c0_i32, %c0_i32_0 : i32, i32
  }
}

module attributes {stable_mosaic.version = 11 : i64} {
  func.func @_encoder_layer_kernel(%arg0: i32, %arg1: memref<16x128xf32, #tpu.memory_space<vmem>>, %arg2: memref<1x1x16xf32, #tpu.memory_space<vmem>>, %arg3: memref<12x128x32xbf16, #tpu.memory_space<vmem>>, %arg4: memref<12x1x32xf32, #tpu.memory_space<vmem>>, %arg5: memref<4x32x128xbf16, #tpu.memory_space<vmem>>, %arg6: memref<1x128xf32, #tpu.memory_space<vmem>>, %arg7: memref<1x128xf32, #tpu.memory_space<vmem>>, %arg8: memref<1x128xf32, #tpu.memory_space<vmem>>, %arg9: memref<128x256xbf16, #tpu.memory_space<vmem>>, %arg10: memref<1x256xf32, #tpu.memory_space<vmem>>, %arg11: memref<256x128xbf16, #tpu.memory_space<vmem>>, %arg12: memref<1x128xf32, #tpu.memory_space<vmem>>, %arg13: memref<1x128xf32, #tpu.memory_space<vmem>>, %arg14: memref<1x128xf32, #tpu.memory_space<vmem>>, %arg15: memref<16x128xf32, #tpu.memory_space<vmem>>, %arg16: memref<1x4x16x16xf32, #tpu.memory_space<vmem>>) attributes {dimension_semantics = [#tpu.dimension_semantics<parallel>], iteration_bounds = array<i64: 2>, scalar_prefetch = 0 : i64, scratch_operands = 0 : i64, tpu.core_type = #tpu.core_type<tc>, window_params = [{transform_indices = @transform_0, window_bounds = array<i64: 16, 128>}, {transform_indices = @transform_1, window_bounds = array<i64: 1, 1, 16>}, {pipeline_mode = #tpu.pipeline_mode<synchronous>, transform_indices = @transform_2, window_bounds = array<i64: 12, 128, 32>}, {pipeline_mode = #tpu.pipeline_mode<synchronous>, transform_indices = @transform_3, window_bounds = array<i64: 12, 1, 32>}, {pipeline_mode = #tpu.pipeline_mode<synchronous>, transform_indices = @transform_4, window_bounds = array<i64: 4, 32, 128>}, {pipeline_mode = #tpu.pipeline_mode<synchronous>, transform_indices = @transform_5, window_bounds = array<i64: 1, 128>}, {pipeline_mode = #tpu.pipeline_mode<synchronous>, transform_indices = @transform_6, window_bounds = array<i64: 1, 128>}, {pipeline_mode = #tpu.pipeline_mode<synchronous>, transform_indices = @transform_7, window_bounds = array<i64: 1, 128>}, {pipeline_mode = #tpu.pipeline_mode<synchronous>, transform_indices = @transform_8, window_bounds = array<i64: 128, 256>}, {pipeline_mode = #tpu.pipeline_mode<synchronous>, transform_indices = @transform_9, window_bounds = array<i64: 1, 256>}, {pipeline_mode = #tpu.pipeline_mode<synchronous>, transform_indices = @transform_10, window_bounds = array<i64: 256, 128>}, {pipeline_mode = #tpu.pipeline_mode<synchronous>, transform_indices = @transform_11, window_bounds = array<i64: 1, 128>}, {pipeline_mode = #tpu.pipeline_mode<synchronous>, transform_indices = @transform_12, window_bounds = array<i64: 1, 128>}, {pipeline_mode = #tpu.pipeline_mode<synchronous>, transform_indices = @transform_13, window_bounds = array<i64: 1, 128>}, {transform_indices = @transform_14, window_bounds = array<i64: 16, 128>}, {transform_indices = @transform_15, window_bounds = array<i64: 1, 4, 16, 16>}]} {
    %c0 = arith.constant 0 : index
    %c0_0 = arith.constant 0 : index
    %0 = vector.load %arg1[%c0, %c0_0] : memref<16x128xf32, #tpu.memory_space<vmem>>, vector<16x128xf32>
    %1 = arith.truncf %0 : vector<16x128xf32> to vector<16x128xbf16>
    %c0_1 = arith.constant 0 : index
    %c0_2 = arith.constant 0 : index
    %c0_3 = arith.constant 0 : index
    %2 = vector.load %arg2[%c0_1, %c0_2, %c0_3] : memref<1x1x16xf32, #tpu.memory_space<vmem>>, vector<1x1x16xf32>
    %3 = vector.shape_cast %2 : vector<1x1x16xf32> to vector<1x16xf32>
    %cst = arith.constant 0.000000e+00 : f32
    %4 = vector.broadcast %cst : f32 to vector<16x128xf32>
    %c0_4 = arith.constant 0 : index
    %c0_5 = arith.constant 0 : index
    %c0_6 = arith.constant 0 : index
    %5 = vector.load %arg3[%c0_4, %c0_5, %c0_6] : memref<12x128x32xbf16, #tpu.memory_space<vmem>>, vector<1x128x32xbf16>
    %6 = vector.shape_cast %5 : vector<1x128x32xbf16> to vector<128x32xbf16>
    %cst_7 = arith.constant dense<0.000000e+00> : vector<16x32xf32>
    %7 = tpu.matmul %1, %6, %cst_7 {dimension_numbers = #tpu.dot_dimension_numbers<[1], [0], [0], [1], [0, 0, 1, 1], [], []>} : vector<16x128xbf16>, vector<128x32xbf16>, vector<16x32xf32> -> vector<16x32xf32>
    %c0_8 = arith.constant 0 : index
    %c0_9 = arith.constant 0 : index
    %c0_10 = arith.constant 0 : index
    %8 = vector.load %arg4[%c0_8, %c0_9, %c0_10] : memref<12x1x32xf32, #tpu.memory_space<vmem>>, vector<1x1x32xf32>
    %9 = vector.shape_cast %8 : vector<1x1x32xf32> to vector<1x32xf32>
    %10 = vector.broadcast %9 : vector<1x32xf32> to vector<16x32xf32>
    %11 = arith.addf %7, %10 : vector<16x32xf32>
    %c4 = arith.constant 4 : index
    %c0_11 = arith.constant 0 : index
    %c0_12 = arith.constant 0 : index
    %12 = vector.load %arg3[%c4, %c0_11, %c0_12] : memref<12x128x32xbf16, #tpu.memory_space<vmem>>, vector<1x128x32xbf16>
    %13 = vector.shape_cast %12 : vector<1x128x32xbf16> to vector<128x32xbf16>
    %cst_13 = arith.constant dense<0.000000e+00> : vector<16x32xf32>
    %14 = tpu.matmul %1, %13, %cst_13 {dimension_numbers = #tpu.dot_dimension_numbers<[1], [0], [0], [1], [0, 0, 1, 1], [], []>} : vector<16x128xbf16>, vector<128x32xbf16>, vector<16x32xf32> -> vector<16x32xf32>
    %c4_14 = arith.constant 4 : index
    %c0_15 = arith.constant 0 : index
    %c0_16 = arith.constant 0 : index
    %15 = vector.load %arg4[%c4_14, %c0_15, %c0_16] : memref<12x1x32xf32, #tpu.memory_space<vmem>>, vector<1x1x32xf32>
    %16 = vector.shape_cast %15 : vector<1x1x32xf32> to vector<1x32xf32>
    %17 = vector.broadcast %16 : vector<1x32xf32> to vector<16x32xf32>
    %18 = arith.addf %14, %17 : vector<16x32xf32>
    %c8 = arith.constant 8 : index
    %c0_17 = arith.constant 0 : index
    %c0_18 = arith.constant 0 : index
    %19 = vector.load %arg3[%c8, %c0_17, %c0_18] : memref<12x128x32xbf16, #tpu.memory_space<vmem>>, vector<1x128x32xbf16>
    %20 = vector.shape_cast %19 : vector<1x128x32xbf16> to vector<128x32xbf16>
    %cst_19 = arith.constant dense<0.000000e+00> : vector<16x32xf32>
    %21 = tpu.matmul %1, %20, %cst_19 {dimension_numbers = #tpu.dot_dimension_numbers<[1], [0], [0], [1], [0, 0, 1, 1], [], []>} : vector<16x128xbf16>, vector<128x32xbf16>, vector<16x32xf32> -> vector<16x32xf32>
    %c8_20 = arith.constant 8 : index
    %c0_21 = arith.constant 0 : index
    %c0_22 = arith.constant 0 : index
    %22 = vector.load %arg4[%c8_20, %c0_21, %c0_22] : memref<12x1x32xf32, #tpu.memory_space<vmem>>, vector<1x1x32xf32>
    %23 = vector.shape_cast %22 : vector<1x1x32xf32> to vector<1x32xf32>
    %24 = vector.broadcast %23 : vector<1x32xf32> to vector<16x32xf32>
    %25 = arith.addf %21, %24 : vector<16x32xf32>
    %26 = tpu.transpose %18, [1, 0] : vector<16x32xf32> -> vector<32x16xf32>
    %cst_23 = arith.constant dense<0.000000e+00> : vector<16x16xf32>
    %27 = tpu.matmul %11, %26, %cst_23 {dimension_numbers = #tpu.dot_dimension_numbers<[1], [0], [0], [1], [0, 0, 1, 1], [], []>} : vector<16x32xf32>, vector<32x16xf32>, vector<16x16xf32> -> vector<16x16xf32>
    %cst_24 = arith.constant 0.176776692 : f32
    %28 = vector.broadcast %cst_24 : f32 to vector<16x16xf32>
    %29 = arith.mulf %27, %28 : vector<16x16xf32>
    %30 = vector.broadcast %3 : vector<1x16xf32> to vector<16x16xf32>
    %31 = arith.addf %29, %30 : vector<16x16xf32>
    %cst_25 = arith.constant dense<0xFF800000> : vector<16xf32>
    %32 = vector.multi_reduction <maximumf>, %31, %cst_25 [1] : vector<16x16xf32> to vector<16xf32>
    %33 = vector.shape_cast %32 : vector<16xf32> to vector<16x1xf32>
    %34 = vector.broadcast %33 : vector<16x1xf32> to vector<16x16xf32>
    %35 = arith.subf %31, %34 : vector<16x16xf32>
    %36 = math.exp %35 : vector<16x16xf32>
    %cst_26 = arith.constant dense<0.000000e+00> : vector<16xf32>
    %37 = vector.multi_reduction <add>, %36, %cst_26 [1] : vector<16x16xf32> to vector<16xf32>
    %38 = vector.shape_cast %37 : vector<16xf32> to vector<16x1xf32>
    %39 = tpu.reciprocal %38 {approx = true} : vector<16x1xf32> -> vector<16x1xf32>
    %40 = vector.broadcast %39 : vector<16x1xf32> to vector<16x16xf32>
    %41 = arith.mulf %36, %40 : vector<16x16xf32>
    %c0_27 = arith.constant 0 : index
    %c0_28 = arith.constant 0 : index
    %c0_29 = arith.constant 0 : index
    %c0_30 = arith.constant 0 : index
    %42 = vector.load %arg16[%c0_27, %c0_28, %c0_29, %c0_30] : memref<1x4x16x16xf32, #tpu.memory_space<vmem>>, vector<1x1x16x16xf32>
    %43 = vector.shape_cast %42 : vector<1x1x16x16xf32> to vector<16x16xf32>
    %44 = vector.shape_cast %41 : vector<16x16xf32> to vector<1x1x16x16xf32>
    tpu.vector_store %arg16[%c0_27, %c0_28, %c0_29, %c0_30], %44 {strides = array<i32>} : memref<1x4x16x16xf32, #tpu.memory_space<vmem>>, vector<1x1x16x16xf32>,
    %cst_31 = arith.constant dense<0.000000e+00> : vector<16x32xf32>
    %45 = tpu.matmul %41, %25, %cst_31 {dimension_numbers = #tpu.dot_dimension_numbers<[1], [0], [0], [1], [0, 0, 1, 1], [], []>} : vector<16x16xf32>, vector<16x32xf32>, vector<16x32xf32> -> vector<16x32xf32>
    %46 = arith.truncf %45 : vector<16x32xf32> to vector<16x32xbf16>
    %c0_32 = arith.constant 0 : index
    %c0_33 = arith.constant 0 : index
    %c0_34 = arith.constant 0 : index
    %47 = vector.load %arg5[%c0_32, %c0_33, %c0_34] : memref<4x32x128xbf16, #tpu.memory_space<vmem>>, vector<1x32x128xbf16>
    %48 = vector.shape_cast %47 : vector<1x32x128xbf16> to vector<32x128xbf16>
    %cst_35 = arith.constant dense<0.000000e+00> : vector<16x128xf32>
    %49 = tpu.matmul %46, %48, %cst_35 {dimension_numbers = #tpu.dot_dimension_numbers<[1], [0], [0], [1], [0, 0, 1, 1], [], []>} : vector<16x32xbf16>, vector<32x128xbf16>, vector<16x128xf32> -> vector<16x128xf32>
    %50 = arith.addf %4, %49 : vector<16x128xf32>
    %c1 = arith.constant 1 : index
    %c0_36 = arith.constant 0 : index
    %c0_37 = arith.constant 0 : index
    %51 = vector.load %arg3[%c1, %c0_36, %c0_37] : memref<12x128x32xbf16, #tpu.memory_space<vmem>>, vector<1x128x32xbf16>
    %52 = vector.shape_cast %51 : vector<1x128x32xbf16> to vector<128x32xbf16>
    %cst_38 = arith.constant dense<0.000000e+00> : vector<16x32xf32>
    %53 = tpu.matmul %1, %52, %cst_38 {dimension_numbers = #tpu.dot_dimension_numbers<[1], [0], [0], [1], [0, 0, 1, 1], [], []>} : vector<16x128xbf16>, vector<128x32xbf16>, vector<16x32xf32> -> vector<16x32xf32>
    %c1_39 = arith.constant 1 : index
    %c0_40 = arith.constant 0 : index
    %c0_41 = arith.constant 0 : index
    %54 = vector.load %arg4[%c1_39, %c0_40, %c0_41] : memref<12x1x32xf32, #tpu.memory_space<vmem>>, vector<1x1x32xf32>
    %55 = vector.shape_cast %54 : vector<1x1x32xf32> to vector<1x32xf32>
    %56 = vector.broadcast %55 : vector<1x32xf32> to vector<16x32xf32>
    %57 = arith.addf %53, %56 : vector<16x32xf32>
    %c5 = arith.constant 5 : index
    %c0_42 = arith.constant 0 : index
    %c0_43 = arith.constant 0 : index
    %58 = vector.load %arg3[%c5, %c0_42, %c0_43] : memref<12x128x32xbf16, #tpu.memory_space<vmem>>, vector<1x128x32xbf16>
    %59 = vector.shape_cast %58 : vector<1x128x32xbf16> to vector<128x32xbf16>
    %cst_44 = arith.constant dense<0.000000e+00> : vector<16x32xf32>
    %60 = tpu.matmul %1, %59, %cst_44 {dimension_numbers = #tpu.dot_dimension_numbers<[1], [0], [0], [1], [0, 0, 1, 1], [], []>} : vector<16x128xbf16>, vector<128x32xbf16>, vector<16x32xf32> -> vector<16x32xf32>
    %c5_45 = arith.constant 5 : index
    %c0_46 = arith.constant 0 : index
    %c0_47 = arith.constant 0 : index
    %61 = vector.load %arg4[%c5_45, %c0_46, %c0_47] : memref<12x1x32xf32, #tpu.memory_space<vmem>>, vector<1x1x32xf32>
    %62 = vector.shape_cast %61 : vector<1x1x32xf32> to vector<1x32xf32>
    %63 = vector.broadcast %62 : vector<1x32xf32> to vector<16x32xf32>
    %64 = arith.addf %60, %63 : vector<16x32xf32>
    %c9 = arith.constant 9 : index
    %c0_48 = arith.constant 0 : index
    %c0_49 = arith.constant 0 : index
    %65 = vector.load %arg3[%c9, %c0_48, %c0_49] : memref<12x128x32xbf16, #tpu.memory_space<vmem>>, vector<1x128x32xbf16>
    %66 = vector.shape_cast %65 : vector<1x128x32xbf16> to vector<128x32xbf16>
    %cst_50 = arith.constant dense<0.000000e+00> : vector<16x32xf32>
    %67 = tpu.matmul %1, %66, %cst_50 {dimension_numbers = #tpu.dot_dimension_numbers<[1], [0], [0], [1], [0, 0, 1, 1], [], []>} : vector<16x128xbf16>, vector<128x32xbf16>, vector<16x32xf32> -> vector<16x32xf32>
    %c9_51 = arith.constant 9 : index
    %c0_52 = arith.constant 0 : index
    %c0_53 = arith.constant 0 : index
    %68 = vector.load %arg4[%c9_51, %c0_52, %c0_53] : memref<12x1x32xf32, #tpu.memory_space<vmem>>, vector<1x1x32xf32>
    %69 = vector.shape_cast %68 : vector<1x1x32xf32> to vector<1x32xf32>
    %70 = vector.broadcast %69 : vector<1x32xf32> to vector<16x32xf32>
    %71 = arith.addf %67, %70 : vector<16x32xf32>
    %72 = tpu.transpose %64, [1, 0] : vector<16x32xf32> -> vector<32x16xf32>
    %cst_54 = arith.constant dense<0.000000e+00> : vector<16x16xf32>
    %73 = tpu.matmul %57, %72, %cst_54 {dimension_numbers = #tpu.dot_dimension_numbers<[1], [0], [0], [1], [0, 0, 1, 1], [], []>} : vector<16x32xf32>, vector<32x16xf32>, vector<16x16xf32> -> vector<16x16xf32>
    %cst_55 = arith.constant 0.176776692 : f32
    %74 = vector.broadcast %cst_55 : f32 to vector<16x16xf32>
    %75 = arith.mulf %73, %74 : vector<16x16xf32>
    %76 = vector.broadcast %3 : vector<1x16xf32> to vector<16x16xf32>
    %77 = arith.addf %75, %76 : vector<16x16xf32>
    %cst_56 = arith.constant dense<0xFF800000> : vector<16xf32>
    %78 = vector.multi_reduction <maximumf>, %77, %cst_56 [1] : vector<16x16xf32> to vector<16xf32>
    %79 = vector.shape_cast %78 : vector<16xf32> to vector<16x1xf32>
    %80 = vector.broadcast %79 : vector<16x1xf32> to vector<16x16xf32>
    %81 = arith.subf %77, %80 : vector<16x16xf32>
    %82 = math.exp %81 : vector<16x16xf32>
    %cst_57 = arith.constant dense<0.000000e+00> : vector<16xf32>
    %83 = vector.multi_reduction <add>, %82, %cst_57 [1] : vector<16x16xf32> to vector<16xf32>
    %84 = vector.shape_cast %83 : vector<16xf32> to vector<16x1xf32>
    %85 = tpu.reciprocal %84 {approx = true} : vector<16x1xf32> -> vector<16x1xf32>
    %86 = vector.broadcast %85 : vector<16x1xf32> to vector<16x16xf32>
    %87 = arith.mulf %82, %86 : vector<16x16xf32>
    %c0_58 = arith.constant 0 : index
    %c1_59 = arith.constant 1 : index
    %c0_60 = arith.constant 0 : index
    %c0_61 = arith.constant 0 : index
    %88 = vector.load %arg16[%c0_58, %c1_59, %c0_60, %c0_61] : memref<1x4x16x16xf32, #tpu.memory_space<vmem>>, vector<1x1x16x16xf32>
    %89 = vector.shape_cast %88 : vector<1x1x16x16xf32> to vector<16x16xf32>
    %90 = vector.shape_cast %87 : vector<16x16xf32> to vector<1x1x16x16xf32>
    tpu.vector_store %arg16[%c0_58, %c1_59, %c0_60, %c0_61], %90 {strides = array<i32>} : memref<1x4x16x16xf32, #tpu.memory_space<vmem>>, vector<1x1x16x16xf32>,
    %cst_62 = arith.constant dense<0.000000e+00> : vector<16x32xf32>
    %91 = tpu.matmul %87, %71, %cst_62 {dimension_numbers = #tpu.dot_dimension_numbers<[1], [0], [0], [1], [0, 0, 1, 1], [], []>} : vector<16x16xf32>, vector<16x32xf32>, vector<16x32xf32> -> vector<16x32xf32>
    %92 = arith.truncf %91 : vector<16x32xf32> to vector<16x32xbf16>
    %c1_63 = arith.constant 1 : index
    %c0_64 = arith.constant 0 : index
    %c0_65 = arith.constant 0 : index
    %93 = vector.load %arg5[%c1_63, %c0_64, %c0_65] : memref<4x32x128xbf16, #tpu.memory_space<vmem>>, vector<1x32x128xbf16>
    %94 = vector.shape_cast %93 : vector<1x32x128xbf16> to vector<32x128xbf16>
    %cst_66 = arith.constant dense<0.000000e+00> : vector<16x128xf32>
    %95 = tpu.matmul %92, %94, %cst_66 {dimension_numbers = #tpu.dot_dimension_numbers<[1], [0], [0], [1], [0, 0, 1, 1], [], []>} : vector<16x32xbf16>, vector<32x128xbf16>, vector<16x128xf32> -> vector<16x128xf32>
    %96 = arith.addf %50, %95 : vector<16x128xf32>
    %c2 = arith.constant 2 : index
    %c0_67 = arith.constant 0 : index
    %c0_68 = arith.constant 0 : index
    %97 = vector.load %arg3[%c2, %c0_67, %c0_68] : memref<12x128x32xbf16, #tpu.memory_space<vmem>>, vector<1x128x32xbf16>
    %98 = vector.shape_cast %97 : vector<1x128x32xbf16> to vector<128x32xbf16>
    %cst_69 = arith.constant dense<0.000000e+00> : vector<16x32xf32>
    %99 = tpu.matmul %1, %98, %cst_69 {dimension_numbers = #tpu.dot_dimension_numbers<[1], [0], [0], [1], [0, 0, 1, 1], [], []>} : vector<16x128xbf16>, vector<128x32xbf16>, vector<16x32xf32> -> vector<16x32xf32>
    %c2_70 = arith.constant 2 : index
    %c0_71 = arith.constant 0 : index
    %c0_72 = arith.constant 0 : index
    %100 = vector.load %arg4[%c2_70, %c0_71, %c0_72] : memref<12x1x32xf32, #tpu.memory_space<vmem>>, vector<1x1x32xf32>
    %101 = vector.shape_cast %100 : vector<1x1x32xf32> to vector<1x32xf32>
    %102 = vector.broadcast %101 : vector<1x32xf32> to vector<16x32xf32>
    %103 = arith.addf %99, %102 : vector<16x32xf32>
    %c6 = arith.constant 6 : index
    %c0_73 = arith.constant 0 : index
    %c0_74 = arith.constant 0 : index
    %104 = vector.load %arg3[%c6, %c0_73, %c0_74] : memref<12x128x32xbf16, #tpu.memory_space<vmem>>, vector<1x128x32xbf16>
    %105 = vector.shape_cast %104 : vector<1x128x32xbf16> to vector<128x32xbf16>
    %cst_75 = arith.constant dense<0.000000e+00> : vector<16x32xf32>
    %106 = tpu.matmul %1, %105, %cst_75 {dimension_numbers = #tpu.dot_dimension_numbers<[1], [0], [0], [1], [0, 0, 1, 1], [], []>} : vector<16x128xbf16>, vector<128x32xbf16>, vector<16x32xf32> -> vector<16x32xf32>
    %c6_76 = arith.constant 6 : index
    %c0_77 = arith.constant 0 : index
    %c0_78 = arith.constant 0 : index
    %107 = vector.load %arg4[%c6_76, %c0_77, %c0_78] : memref<12x1x32xf32, #tpu.memory_space<vmem>>, vector<1x1x32xf32>
    %108 = vector.shape_cast %107 : vector<1x1x32xf32> to vector<1x32xf32>
    %109 = vector.broadcast %108 : vector<1x32xf32> to vector<16x32xf32>
    %110 = arith.addf %106, %109 : vector<16x32xf32>
    %c10 = arith.constant 10 : index
    %c0_79 = arith.constant 0 : index
    %c0_80 = arith.constant 0 : index
    %111 = vector.load %arg3[%c10, %c0_79, %c0_80] : memref<12x128x32xbf16, #tpu.memory_space<vmem>>, vector<1x128x32xbf16>
    %112 = vector.shape_cast %111 : vector<1x128x32xbf16> to vector<128x32xbf16>
    %cst_81 = arith.constant dense<0.000000e+00> : vector<16x32xf32>
    %113 = tpu.matmul %1, %112, %cst_81 {dimension_numbers = #tpu.dot_dimension_numbers<[1], [0], [0], [1], [0, 0, 1, 1], [], []>} : vector<16x128xbf16>, vector<128x32xbf16>, vector<16x32xf32> -> vector<16x32xf32>
    %c10_82 = arith.constant 10 : index
    %c0_83 = arith.constant 0 : index
    %c0_84 = arith.constant 0 : index
    %114 = vector.load %arg4[%c10_82, %c0_83, %c0_84] : memref<12x1x32xf32, #tpu.memory_space<vmem>>, vector<1x1x32xf32>
    %115 = vector.shape_cast %114 : vector<1x1x32xf32> to vector<1x32xf32>
    %116 = vector.broadcast %115 : vector<1x32xf32> to vector<16x32xf32>
    %117 = arith.addf %113, %116 : vector<16x32xf32>
    %118 = tpu.transpose %110, [1, 0] : vector<16x32xf32> -> vector<32x16xf32>
    %cst_85 = arith.constant dense<0.000000e+00> : vector<16x16xf32>
    %119 = tpu.matmul %103, %118, %cst_85 {dimension_numbers = #tpu.dot_dimension_numbers<[1], [0], [0], [1], [0, 0, 1, 1], [], []>} : vector<16x32xf32>, vector<32x16xf32>, vector<16x16xf32> -> vector<16x16xf32>
    %cst_86 = arith.constant 0.176776692 : f32
    %120 = vector.broadcast %cst_86 : f32 to vector<16x16xf32>
    %121 = arith.mulf %119, %120 : vector<16x16xf32>
    %122 = vector.broadcast %3 : vector<1x16xf32> to vector<16x16xf32>
    %123 = arith.addf %121, %122 : vector<16x16xf32>
    %cst_87 = arith.constant dense<0xFF800000> : vector<16xf32>
    %124 = vector.multi_reduction <maximumf>, %123, %cst_87 [1] : vector<16x16xf32> to vector<16xf32>
    %125 = vector.shape_cast %124 : vector<16xf32> to vector<16x1xf32>
    %126 = vector.broadcast %125 : vector<16x1xf32> to vector<16x16xf32>
    %127 = arith.subf %123, %126 : vector<16x16xf32>
    %128 = math.exp %127 : vector<16x16xf32>
    %cst_88 = arith.constant dense<0.000000e+00> : vector<16xf32>
    %129 = vector.multi_reduction <add>, %128, %cst_88 [1] : vector<16x16xf32> to vector<16xf32>
    %130 = vector.shape_cast %129 : vector<16xf32> to vector<16x1xf32>
    %131 = tpu.reciprocal %130 {approx = true} : vector<16x1xf32> -> vector<16x1xf32>
    %132 = vector.broadcast %131 : vector<16x1xf32> to vector<16x16xf32>
    %133 = arith.mulf %128, %132 : vector<16x16xf32>
    %c0_89 = arith.constant 0 : index
    %c2_90 = arith.constant 2 : index
    %c0_91 = arith.constant 0 : index
    %c0_92 = arith.constant 0 : index
    %134 = vector.load %arg16[%c0_89, %c2_90, %c0_91, %c0_92] : memref<1x4x16x16xf32, #tpu.memory_space<vmem>>, vector<1x1x16x16xf32>
    %135 = vector.shape_cast %134 : vector<1x1x16x16xf32> to vector<16x16xf32>
    %136 = vector.shape_cast %133 : vector<16x16xf32> to vector<1x1x16x16xf32>
    tpu.vector_store %arg16[%c0_89, %c2_90, %c0_91, %c0_92], %136 {strides = array<i32>} : memref<1x4x16x16xf32, #tpu.memory_space<vmem>>, vector<1x1x16x16xf32>,
    %cst_93 = arith.constant dense<0.000000e+00> : vector<16x32xf32>
    %137 = tpu.matmul %133, %117, %cst_93 {dimension_numbers = #tpu.dot_dimension_numbers<[1], [0], [0], [1], [0, 0, 1, 1], [], []>} : vector<16x16xf32>, vector<16x32xf32>, vector<16x32xf32> -> vector<16x32xf32>
    %138 = arith.truncf %137 : vector<16x32xf32> to vector<16x32xbf16>
    %c2_94 = arith.constant 2 : index
    %c0_95 = arith.constant 0 : index
    %c0_96 = arith.constant 0 : index
    %139 = vector.load %arg5[%c2_94, %c0_95, %c0_96] : memref<4x32x128xbf16, #tpu.memory_space<vmem>>, vector<1x32x128xbf16>
    %140 = vector.shape_cast %139 : vector<1x32x128xbf16> to vector<32x128xbf16>
    %cst_97 = arith.constant dense<0.000000e+00> : vector<16x128xf32>
    %141 = tpu.matmul %138, %140, %cst_97 {dimension_numbers = #tpu.dot_dimension_numbers<[1], [0], [0], [1], [0, 0, 1, 1], [], []>} : vector<16x32xbf16>, vector<32x128xbf16>, vector<16x128xf32> -> vector<16x128xf32>
    %142 = arith.addf %96, %141 : vector<16x128xf32>
    %c3 = arith.constant 3 : index
    %c0_98 = arith.constant 0 : index
    %c0_99 = arith.constant 0 : index
    %143 = vector.load %arg3[%c3, %c0_98, %c0_99] : memref<12x128x32xbf16, #tpu.memory_space<vmem>>, vector<1x128x32xbf16>
    %144 = vector.shape_cast %143 : vector<1x128x32xbf16> to vector<128x32xbf16>
    %cst_100 = arith.constant dense<0.000000e+00> : vector<16x32xf32>
    %145 = tpu.matmul %1, %144, %cst_100 {dimension_numbers = #tpu.dot_dimension_numbers<[1], [0], [0], [1], [0, 0, 1, 1], [], []>} : vector<16x128xbf16>, vector<128x32xbf16>, vector<16x32xf32> -> vector<16x32xf32>
    %c3_101 = arith.constant 3 : index
    %c0_102 = arith.constant 0 : index
    %c0_103 = arith.constant 0 : index
    %146 = vector.load %arg4[%c3_101, %c0_102, %c0_103] : memref<12x1x32xf32, #tpu.memory_space<vmem>>, vector<1x1x32xf32>
    %147 = vector.shape_cast %146 : vector<1x1x32xf32> to vector<1x32xf32>
    %148 = vector.broadcast %147 : vector<1x32xf32> to vector<16x32xf32>
    %149 = arith.addf %145, %148 : vector<16x32xf32>
    %c7 = arith.constant 7 : index
    %c0_104 = arith.constant 0 : index
    %c0_105 = arith.constant 0 : index
    %150 = vector.load %arg3[%c7, %c0_104, %c0_105] : memref<12x128x32xbf16, #tpu.memory_space<vmem>>, vector<1x128x32xbf16>
    %151 = vector.shape_cast %150 : vector<1x128x32xbf16> to vector<128x32xbf16>
    %cst_106 = arith.constant dense<0.000000e+00> : vector<16x32xf32>
    %152 = tpu.matmul %1, %151, %cst_106 {dimension_numbers = #tpu.dot_dimension_numbers<[1], [0], [0], [1], [0, 0, 1, 1], [], []>} : vector<16x128xbf16>, vector<128x32xbf16>, vector<16x32xf32> -> vector<16x32xf32>
    %c7_107 = arith.constant 7 : index
    %c0_108 = arith.constant 0 : index
    %c0_109 = arith.constant 0 : index
    %153 = vector.load %arg4[%c7_107, %c0_108, %c0_109] : memref<12x1x32xf32, #tpu.memory_space<vmem>>, vector<1x1x32xf32>
    %154 = vector.shape_cast %153 : vector<1x1x32xf32> to vector<1x32xf32>
    %155 = vector.broadcast %154 : vector<1x32xf32> to vector<16x32xf32>
    %156 = arith.addf %152, %155 : vector<16x32xf32>
    %c11 = arith.constant 11 : index
    %c0_110 = arith.constant 0 : index
    %c0_111 = arith.constant 0 : index
    %157 = vector.load %arg3[%c11, %c0_110, %c0_111] : memref<12x128x32xbf16, #tpu.memory_space<vmem>>, vector<1x128x32xbf16>
    %158 = vector.shape_cast %157 : vector<1x128x32xbf16> to vector<128x32xbf16>
    %cst_112 = arith.constant dense<0.000000e+00> : vector<16x32xf32>
    %159 = tpu.matmul %1, %158, %cst_112 {dimension_numbers = #tpu.dot_dimension_numbers<[1], [0], [0], [1], [0, 0, 1, 1], [], []>} : vector<16x128xbf16>, vector<128x32xbf16>, vector<16x32xf32> -> vector<16x32xf32>
    %c11_113 = arith.constant 11 : index
    %c0_114 = arith.constant 0 : index
    %c0_115 = arith.constant 0 : index
    %160 = vector.load %arg4[%c11_113, %c0_114, %c0_115] : memref<12x1x32xf32, #tpu.memory_space<vmem>>, vector<1x1x32xf32>
    %161 = vector.shape_cast %160 : vector<1x1x32xf32> to vector<1x32xf32>
    %162 = vector.broadcast %161 : vector<1x32xf32> to vector<16x32xf32>
    %163 = arith.addf %159, %162 : vector<16x32xf32>
    %164 = tpu.transpose %156, [1, 0] : vector<16x32xf32> -> vector<32x16xf32>
    %cst_116 = arith.constant dense<0.000000e+00> : vector<16x16xf32>
    %165 = tpu.matmul %149, %164, %cst_116 {dimension_numbers = #tpu.dot_dimension_numbers<[1], [0], [0], [1], [0, 0, 1, 1], [], []>} : vector<16x32xf32>, vector<32x16xf32>, vector<16x16xf32> -> vector<16x16xf32>
    %cst_117 = arith.constant 0.176776692 : f32
    %166 = vector.broadcast %cst_117 : f32 to vector<16x16xf32>
    %167 = arith.mulf %165, %166 : vector<16x16xf32>
    %168 = vector.broadcast %3 : vector<1x16xf32> to vector<16x16xf32>
    %169 = arith.addf %167, %168 : vector<16x16xf32>
    %cst_118 = arith.constant dense<0xFF800000> : vector<16xf32>
    %170 = vector.multi_reduction <maximumf>, %169, %cst_118 [1] : vector<16x16xf32> to vector<16xf32>
    %171 = vector.shape_cast %170 : vector<16xf32> to vector<16x1xf32>
    %172 = vector.broadcast %171 : vector<16x1xf32> to vector<16x16xf32>
    %173 = arith.subf %169, %172 : vector<16x16xf32>
    %174 = math.exp %173 : vector<16x16xf32>
    %cst_119 = arith.constant dense<0.000000e+00> : vector<16xf32>
    %175 = vector.multi_reduction <add>, %174, %cst_119 [1] : vector<16x16xf32> to vector<16xf32>
    %176 = vector.shape_cast %175 : vector<16xf32> to vector<16x1xf32>
    %177 = tpu.reciprocal %176 {approx = true} : vector<16x1xf32> -> vector<16x1xf32>
    %178 = vector.broadcast %177 : vector<16x1xf32> to vector<16x16xf32>
    %179 = arith.mulf %174, %178 : vector<16x16xf32>
    %c0_120 = arith.constant 0 : index
    %c3_121 = arith.constant 3 : index
    %c0_122 = arith.constant 0 : index
    %c0_123 = arith.constant 0 : index
    %180 = vector.load %arg16[%c0_120, %c3_121, %c0_122, %c0_123] : memref<1x4x16x16xf32, #tpu.memory_space<vmem>>, vector<1x1x16x16xf32>
    %181 = vector.shape_cast %180 : vector<1x1x16x16xf32> to vector<16x16xf32>
    %182 = vector.shape_cast %179 : vector<16x16xf32> to vector<1x1x16x16xf32>
    tpu.vector_store %arg16[%c0_120, %c3_121, %c0_122, %c0_123], %182 {strides = array<i32>} : memref<1x4x16x16xf32, #tpu.memory_space<vmem>>, vector<1x1x16x16xf32>,
    %cst_124 = arith.constant dense<0.000000e+00> : vector<16x32xf32>
    %183 = tpu.matmul %179, %163, %cst_124 {dimension_numbers = #tpu.dot_dimension_numbers<[1], [0], [0], [1], [0, 0, 1, 1], [], []>} : vector<16x16xf32>, vector<16x32xf32>, vector<16x32xf32> -> vector<16x32xf32>
    %184 = arith.truncf %183 : vector<16x32xf32> to vector<16x32xbf16>
    %c3_125 = arith.constant 3 : index
    %c0_126 = arith.constant 0 : index
    %c0_127 = arith.constant 0 : index
    %185 = vector.load %arg5[%c3_125, %c0_126, %c0_127] : memref<4x32x128xbf16, #tpu.memory_space<vmem>>, vector<1x32x128xbf16>
    %186 = vector.shape_cast %185 : vector<1x32x128xbf16> to vector<32x128xbf16>
    %cst_128 = arith.constant dense<0.000000e+00> : vector<16x128xf32>
    %187 = tpu.matmul %184, %186, %cst_128 {dimension_numbers = #tpu.dot_dimension_numbers<[1], [0], [0], [1], [0, 0, 1, 1], [], []>} : vector<16x32xbf16>, vector<32x128xbf16>, vector<16x128xf32> -> vector<16x128xf32>
    %188 = arith.addf %142, %187 : vector<16x128xf32>
    %c0_129 = arith.constant 0 : index
    %c0_130 = arith.constant 0 : index
    %189 = vector.load %arg6[%c0_129, %c0_130] : memref<1x128xf32, #tpu.memory_space<vmem>>, vector<1x128xf32>
    %190 = vector.broadcast %189 : vector<1x128xf32> to vector<16x128xf32>
    %191 = arith.addf %188, %190 : vector<16x128xf32>
    %192 = arith.addf %191, %0 : vector<16x128xf32>
    %c0_131 = arith.constant 0 : index
    %c0_132 = arith.constant 0 : index
    %193 = vector.load %arg7[%c0_131, %c0_132] : memref<1x128xf32, #tpu.memory_space<vmem>>, vector<1x128xf32>
    %c0_133 = arith.constant 0 : index
    %c0_134 = arith.constant 0 : index
    %194 = vector.load %arg8[%c0_133, %c0_134] : memref<1x128xf32, #tpu.memory_space<vmem>>, vector<1x128xf32>
    %cst_135 = arith.constant dense<0.000000e+00> : vector<16xf32>
    %195 = vector.multi_reduction <add>, %192, %cst_135 [1] : vector<16x128xf32> to vector<16xf32>
    %196 = vector.shape_cast %195 : vector<16xf32> to vector<16x1xf32>
    %cst_136 = arith.constant 1.280000e+02 : f32
    %197 = vector.broadcast %cst_136 : f32 to vector<16x1xf32>
    %198 = arith.divf %196, %197 : vector<16x1xf32>
    %199 = vector.broadcast %198 : vector<16x1xf32> to vector<16x128xf32>
    %200 = arith.subf %192, %199 : vector<16x128xf32>
    %201 = arith.mulf %200, %200 : vector<16x128xf32>
    %cst_137 = arith.constant dense<0.000000e+00> : vector<16xf32>
    %202 = vector.multi_reduction <add>, %201, %cst_137 [1] : vector<16x128xf32> to vector<16xf32>
    %203 = vector.shape_cast %202 : vector<16xf32> to vector<16x1xf32>
    %cst_138 = arith.constant 1.280000e+02 : f32
    %204 = vector.broadcast %cst_138 : f32 to vector<16x1xf32>
    %205 = arith.divf %203, %204 : vector<16x1xf32>
    %cst_139 = arith.constant 9.99999996E-13 : f32
    %206 = vector.broadcast %cst_139 : f32 to vector<16x1xf32>
    %207 = arith.addf %205, %206 : vector<16x1xf32>
    %208 = math.rsqrt %207 : vector<16x1xf32>
    %209 = vector.broadcast %208 : vector<16x1xf32> to vector<16x128xf32>
    %210 = arith.mulf %200, %209 : vector<16x128xf32>
    %211 = vector.broadcast %193 : vector<1x128xf32> to vector<16x128xf32>
    %212 = arith.mulf %210, %211 : vector<16x128xf32>
    %213 = vector.broadcast %194 : vector<1x128xf32> to vector<16x128xf32>
    %214 = arith.addf %212, %213 : vector<16x128xf32>
    %215 = arith.truncf %214 : vector<16x128xf32> to vector<16x128xbf16>
    %c0_140 = arith.constant 0 : index
    %c0_141 = arith.constant 0 : index
    %216 = vector.load %arg9[%c0_140, %c0_141] : memref<128x256xbf16, #tpu.memory_space<vmem>>, vector<128x256xbf16>
    %cst_142 = arith.constant dense<0.000000e+00> : vector<16x256xf32>
    %217 = tpu.matmul %215, %216, %cst_142 {dimension_numbers = #tpu.dot_dimension_numbers<[1], [0], [0], [1], [0, 0, 1, 1], [], []>} : vector<16x128xbf16>, vector<128x256xbf16>, vector<16x256xf32> -> vector<16x256xf32>
    %c0_143 = arith.constant 0 : index
    %c0_144 = arith.constant 0 : index
    %218 = vector.load %arg10[%c0_143, %c0_144] : memref<1x256xf32, #tpu.memory_space<vmem>>, vector<1x256xf32>
    %219 = vector.broadcast %218 : vector<1x256xf32> to vector<16x256xf32>
    %220 = arith.addf %217, %219 : vector<16x256xf32>
    %cst_145 = arith.constant 5.000000e-01 : f32
    %221 = vector.broadcast %cst_145 : f32 to vector<16x256xf32>
    %222 = arith.mulf %221, %220 : vector<16x256xf32>
    %cst_146 = arith.constant 4.471500e-02 : f32
    %223 = vector.broadcast %cst_146 : f32 to vector<16x256xf32>
    %224 = arith.mulf %223, %220 : vector<16x256xf32>
    %225 = arith.mulf %224, %220 : vector<16x256xf32>
    %226 = arith.mulf %225, %220 : vector<16x256xf32>
    %227 = arith.addf %220, %226 : vector<16x256xf32>
    %cst_147 = arith.constant 0.797884583 : f32
    %228 = vector.broadcast %cst_147 : f32 to vector<16x256xf32>
    %229 = arith.mulf %228, %227 : vector<16x256xf32>
    %230 = math.tanh %229 : vector<16x256xf32>
    %cst_148 = arith.constant 1.000000e+00 : f32
    %231 = vector.broadcast %cst_148 : f32 to vector<16x256xf32>
    %232 = arith.addf %231, %230 : vector<16x256xf32>
    %233 = arith.mulf %222, %232 : vector<16x256xf32>
    %234 = arith.truncf %233 : vector<16x256xf32> to vector<16x256xbf16>
    %c0_149 = arith.constant 0 : index
    %c0_150 = arith.constant 0 : index
    %235 = vector.load %arg11[%c0_149, %c0_150] : memref<256x128xbf16, #tpu.memory_space<vmem>>, vector<256x128xbf16>
    %cst_151 = arith.constant dense<0.000000e+00> : vector<16x128xf32>
    %236 = tpu.matmul %234, %235, %cst_151 {dimension_numbers = #tpu.dot_dimension_numbers<[1], [0], [0], [1], [0, 0, 1, 1], [], []>} : vector<16x256xbf16>, vector<256x128xbf16>, vector<16x128xf32> -> vector<16x128xf32>
    %c0_152 = arith.constant 0 : index
    %c0_153 = arith.constant 0 : index
    %237 = vector.load %arg12[%c0_152, %c0_153] : memref<1x128xf32, #tpu.memory_space<vmem>>, vector<1x128xf32>
    %238 = vector.broadcast %237 : vector<1x128xf32> to vector<16x128xf32>
    %239 = arith.addf %236, %238 : vector<16x128xf32>
    %240 = arith.addf %239, %214 : vector<16x128xf32>
    %c0_154 = arith.constant 0 : index
    %c0_155 = arith.constant 0 : index
    %241 = vector.load %arg13[%c0_154, %c0_155] : memref<1x128xf32, #tpu.memory_space<vmem>>, vector<1x128xf32>
    %c0_156 = arith.constant 0 : index
    %c0_157 = arith.constant 0 : index
    %242 = vector.load %arg14[%c0_156, %c0_157] : memref<1x128xf32, #tpu.memory_space<vmem>>, vector<1x128xf32>
    %cst_158 = arith.constant dense<0.000000e+00> : vector<16xf32>
    %243 = vector.multi_reduction <add>, %240, %cst_158 [1] : vector<16x128xf32> to vector<16xf32>
    %244 = vector.shape_cast %243 : vector<16xf32> to vector<16x1xf32>
    %cst_159 = arith.constant 1.280000e+02 : f32
    %245 = vector.broadcast %cst_159 : f32 to vector<16x1xf32>
    %246 = arith.divf %244, %245 : vector<16x1xf32>
    %247 = vector.broadcast %246 : vector<16x1xf32> to vector<16x128xf32>
    %248 = arith.subf %240, %247 : vector<16x128xf32>
    %249 = arith.mulf %248, %248 : vector<16x128xf32>
    %cst_160 = arith.constant dense<0.000000e+00> : vector<16xf32>
    %250 = vector.multi_reduction <add>, %249, %cst_160 [1] : vector<16x128xf32> to vector<16xf32>
    %251 = vector.shape_cast %250 : vector<16xf32> to vector<16x1xf32>
    %cst_161 = arith.constant 1.280000e+02 : f32
    %252 = vector.broadcast %cst_161 : f32 to vector<16x1xf32>
    %253 = arith.divf %251, %252 : vector<16x1xf32>
    %cst_162 = arith.constant 9.99999996E-13 : f32
    %254 = vector.broadcast %cst_162 : f32 to vector<16x1xf32>
    %255 = arith.addf %253, %254 : vector<16x1xf32>
    %256 = math.rsqrt %255 : vector<16x1xf32>
    %257 = vector.broadcast %256 : vector<16x1xf32> to vector<16x128xf32>
    %258 = arith.mulf %248, %257 : vector<16x128xf32>
    %259 = vector.broadcast %241 : vector<1x128xf32> to vector<16x128xf32>
    %260 = arith.mulf %258, %259 : vector<16x128xf32>
    %261 = vector.broadcast %242 : vector<1x128xf32> to vector<16x128xf32>
    %262 = arith.addf %260, %261 : vector<16x128xf32>
    %c0_163 = arith.constant 0 : index
    %c0_164 = arith.constant 0 : index
    %263 = vector.load %arg15[%c0_163, %c0_164] : memref<16x128xf32, #tpu.memory_space<vmem>>, vector<16x128xf32>
    tpu.vector_store %arg15[%c0_163, %c0_164], %262 {strides = array<i32>} : memref<16x128xf32, #tpu.memory_space<vmem>>, vector<16x128xf32>,
    return
  }
  func.func @transform_0(%arg0: i32) -> (i32, i32) {
    %c0_i32 = arith.constant 0 : i32
    %c0_i32_0 = arith.constant 0 : i32
    return %arg0, %c0_i32 : i32, i32
  }
  func.func @transform_1(%arg0: i32) -> (i32, i32, i32) {
    %c0_i32 = arith.constant 0 : i32
    %c0_i32_0 = arith.constant 0 : i32
    %c0_i32_1 = arith.constant 0 : i32
    return %arg0, %c0_i32, %c0_i32_0 : i32, i32, i32
  }
  func.func @transform_2(%arg0: i32) -> (i32, i32, i32) {
    %c0_i32 = arith.constant 0 : i32
    %c0_i32_0 = arith.constant 0 : i32
    %c0_i32_1 = arith.constant 0 : i32
    %c0_i32_2 = arith.constant 0 : i32
    return %c0_i32, %c0_i32_0, %c0_i32_1 : i32, i32, i32
  }
  func.func @transform_3(%arg0: i32) -> (i32, i32, i32) {
    %c0_i32 = arith.constant 0 : i32
    %c0_i32_0 = arith.constant 0 : i32
    %c0_i32_1 = arith.constant 0 : i32
    %c0_i32_2 = arith.constant 0 : i32
    return %c0_i32, %c0_i32_0, %c0_i32_1 : i32, i32, i32
  }
  func.func @transform_4(%arg0: i32) -> (i32, i32, i32) {
    %c0_i32 = arith.constant 0 : i32
    %c0_i32_0 = arith.constant 0 : i32
    %c0_i32_1 = arith.constant 0 : i32
    %c0_i32_2 = arith.constant 0 : i32
    return %c0_i32, %c0_i32_0, %c0_i32_1 : i32, i32, i32
  }
  func.func @transform_5(%arg0: i32) -> (i32, i32) {
    %c0_i32 = arith.constant 0 : i32
    %c0_i32_0 = arith.constant 0 : i32
    %c0_i32_1 = arith.constant 0 : i32
    return %c0_i32, %c0_i32_0 : i32, i32
  }
  func.func @transform_6(%arg0: i32) -> (i32, i32) {
    %c0_i32 = arith.constant 0 : i32
    %c0_i32_0 = arith.constant 0 : i32
    %c0_i32_1 = arith.constant 0 : i32
    return %c0_i32, %c0_i32_0 : i32, i32
  }
  func.func @transform_7(%arg0: i32) -> (i32, i32) {
    %c0_i32 = arith.constant 0 : i32
    %c0_i32_0 = arith.constant 0 : i32
    %c0_i32_1 = arith.constant 0 : i32
    return %c0_i32, %c0_i32_0 : i32, i32
  }
  func.func @transform_8(%arg0: i32) -> (i32, i32) {
    %c0_i32 = arith.constant 0 : i32
    %c0_i32_0 = arith.constant 0 : i32
    %c0_i32_1 = arith.constant 0 : i32
    return %c0_i32, %c0_i32_0 : i32, i32
  }
  func.func @transform_9(%arg0: i32) -> (i32, i32) {
    %c0_i32 = arith.constant 0 : i32
    %c0_i32_0 = arith.constant 0 : i32
    %c0_i32_1 = arith.constant 0 : i32
    return %c0_i32, %c0_i32_0 : i32, i32
  }
  func.func @transform_10(%arg0: i32) -> (i32, i32) {
    %c0_i32 = arith.constant 0 : i32
    %c0_i32_0 = arith.constant 0 : i32
    %c0_i32_1 = arith.constant 0 : i32
    return %c0_i32, %c0_i32_0 : i32, i32
  }
  func.func @transform_11(%arg0: i32) -> (i32, i32) {
    %c0_i32 = arith.constant 0 : i32
    %c0_i32_0 = arith.constant 0 : i32
    %c0_i32_1 = arith.constant 0 : i32
    return %c0_i32, %c0_i32_0 : i32, i32
  }
  func.func @transform_12(%arg0: i32) -> (i32, i32) {
    %c0_i32 = arith.constant 0 : i32
    %c0_i32_0 = arith.constant 0 : i32
    %c0_i32_1 = arith.constant 0 : i32
    return %c0_i32, %c0_i32_0 : i32, i32
  }
  func.func @transform_13(%arg0: i32) -> (i32, i32) {
    %c0_i32 = arith.constant 0 : i32
    %c0_i32_0 = arith.constant 0 : i32
    %c0_i32_1 = arith.constant 0 : i32
    return %c0_i32, %c0_i32_0 : i32, i32
  }
  func.func @transform_14(%arg0: i32) -> (i32, i32) {
    %c0_i32 = arith.constant 0 : i32
    %c0_i32_0 = arith.constant 0 : i32
    return %arg0, %c0_i32 : i32, i32
  }
  func.func @transform_15(%arg0: i32) -> (i32, i32, i32, i32) {
    %c0_i32 = arith.constant 0 : i32
    %c0_i32_0 = arith.constant 0 : i32
    %c0_i32_1 = arith.constant 0 : i32
    %c0_i32_2 = arith.constant 0 : i32
    return %arg0, %c0_i32, %c0_i32_0, %c0_i32_1 : i32, i32, i32, i32
  }
}

module attributes {stable_mosaic.version = 11 : i64} {
  func.func @_head_kernel(%arg0: i32, %arg1: memref<2x128xf32, #tpu.memory_space<vmem>>, %arg2: memref<128x128xf32, #tpu.memory_space<vmem>>, %arg3: memref<1x128xf32, #tpu.memory_space<vmem>>, %arg4: memref<128x3xf32, #tpu.memory_space<vmem>>, %arg5: memref<1x3xf32, #tpu.memory_space<vmem>>, %arg6: memref<2x3xf32, #tpu.memory_space<vmem>>, %arg7: memref<2x3xf32, #tpu.memory_space<vmem>>, %arg8: memref<1x1xf32, #tpu.memory_space<vmem>>) attributes {dimension_semantics = [#tpu.dimension_semantics<arbitrary>], iteration_bounds = array<i64: 1>, scalar_prefetch = 0 : i64, scratch_operands = 0 : i64, tpu.core_type = #tpu.core_type<tc>, window_params = [{pipeline_mode = #tpu.pipeline_mode<synchronous>, transform_indices = @transform_0, window_bounds = array<i64: 2, 128>}, {pipeline_mode = #tpu.pipeline_mode<synchronous>, transform_indices = @transform_1, window_bounds = array<i64: 128, 128>}, {pipeline_mode = #tpu.pipeline_mode<synchronous>, transform_indices = @transform_2, window_bounds = array<i64: 1, 128>}, {pipeline_mode = #tpu.pipeline_mode<synchronous>, transform_indices = @transform_3, window_bounds = array<i64: 128, 3>}, {pipeline_mode = #tpu.pipeline_mode<synchronous>, transform_indices = @transform_4, window_bounds = array<i64: 1, 3>}, {pipeline_mode = #tpu.pipeline_mode<synchronous>, transform_indices = @transform_5, window_bounds = array<i64: 2, 3>}, {pipeline_mode = #tpu.pipeline_mode<synchronous>, transform_indices = @transform_6, window_bounds = array<i64: 2, 3>}, {pipeline_mode = #tpu.pipeline_mode<synchronous>, transform_indices = @transform_7, window_bounds = array<i64: 1, 1>}]} {
    %c0 = arith.constant 0 : index
    %c0_0 = arith.constant 0 : index
    %0 = vector.load %arg1[%c0, %c0_0] : memref<2x128xf32, #tpu.memory_space<vmem>>, vector<2x128xf32>
    %c0_1 = arith.constant 0 : index
    %c0_2 = arith.constant 0 : index
    %1 = vector.load %arg2[%c0_1, %c0_2] : memref<128x128xf32, #tpu.memory_space<vmem>>, vector<128x128xf32>
    %cst = arith.constant dense<0.000000e+00> : vector<2x128xf32>
    %2 = tpu.matmul %0, %1, %cst {dimension_numbers = #tpu.dot_dimension_numbers<[1], [0], [0], [1], [0, 0, 1, 1], [], []>} : vector<2x128xf32>, vector<128x128xf32>, vector<2x128xf32> -> vector<2x128xf32>
    %c0_3 = arith.constant 0 : index
    %c0_4 = arith.constant 0 : index
    %3 = vector.load %arg3[%c0_3, %c0_4] : memref<1x128xf32, #tpu.memory_space<vmem>>, vector<1x128xf32>
    %4 = vector.broadcast %3 : vector<1x128xf32> to vector<2x128xf32>
    %5 = arith.addf %2, %4 : vector<2x128xf32>
    %6 = math.tanh %5 : vector<2x128xf32>
    %c0_5 = arith.constant 0 : index
    %c0_6 = arith.constant 0 : index
    %7 = vector.load %arg4[%c0_5, %c0_6] : memref<128x3xf32, #tpu.memory_space<vmem>>, vector<128x3xf32>
    %cst_7 = arith.constant dense<0.000000e+00> : vector<2x3xf32>
    %8 = tpu.matmul %6, %7, %cst_7 {dimension_numbers = #tpu.dot_dimension_numbers<[1], [0], [0], [1], [0, 0, 1, 1], [], []>} : vector<2x128xf32>, vector<128x3xf32>, vector<2x3xf32> -> vector<2x3xf32>
    %c0_8 = arith.constant 0 : index
    %c0_9 = arith.constant 0 : index
    %9 = vector.load %arg5[%c0_8, %c0_9] : memref<1x3xf32, #tpu.memory_space<vmem>>, vector<1x3xf32>
    %10 = vector.broadcast %9 : vector<1x3xf32> to vector<2x3xf32>
    %11 = arith.addf %8, %10 : vector<2x3xf32>
    %c0_10 = arith.constant 0 : index
    %c0_11 = arith.constant 0 : index
    %12 = vector.load %arg7[%c0_10, %c0_11] : memref<2x3xf32, #tpu.memory_space<vmem>>, vector<2x3xf32>
    tpu.vector_store %arg7[%c0_10, %c0_11], %11 {strides = array<i32>} : memref<2x3xf32, #tpu.memory_space<vmem>>, vector<2x3xf32>,
    %cst_12 = arith.constant dense<0xFF800000> : vector<2xf32>
    %13 = vector.multi_reduction <maximumf>, %11, %cst_12 [1] : vector<2x3xf32> to vector<2xf32>
    %14 = vector.shape_cast %13 : vector<2xf32> to vector<2x1xf32>
    %15 = vector.broadcast %14 : vector<2x1xf32> to vector<2x3xf32>
    %16 = arith.subf %11, %15 : vector<2x3xf32>
    %17 = math.exp %16 : vector<2x3xf32>
    %cst_13 = arith.constant dense<0.000000e+00> : vector<2xf32>
    %18 = vector.multi_reduction <add>, %17, %cst_13 [1] : vector<2x3xf32> to vector<2xf32>
    %19 = vector.shape_cast %18 : vector<2xf32> to vector<2x1xf32>
    %20 = math.log %19 : vector<2x1xf32>
    %21 = arith.addf %20, %14 : vector<2x1xf32>
    %c0_14 = arith.constant 0 : index
    %c0_15 = arith.constant 0 : index
    %22 = vector.load %arg6[%c0_14, %c0_15] : memref<2x3xf32, #tpu.memory_space<vmem>>, vector<2x3xf32>
    %23 = arith.mulf %22, %11 : vector<2x3xf32>
    %cst_16 = arith.constant dense<0.000000e+00> : vector<2xf32>
    %24 = vector.multi_reduction <add>, %23, %cst_16 [1] : vector<2x3xf32> to vector<2xf32>
    %25 = vector.shape_cast %24 : vector<2xf32> to vector<2x1xf32>
    %26 = arith.subf %21, %25 : vector<2x1xf32>
    %cst_17 = arith.constant dense<0.000000e+00> : vector<1xf32>
    %27 = vector.multi_reduction <add>, %26, %cst_17 [0] : vector<2x1xf32> to vector<1xf32>
    %28 = vector.shape_cast %27 : vector<1xf32> to vector<1x1xf32>
    %cst_18 = arith.constant 2.000000e+00 : f32
    %29 = vector.broadcast %cst_18 : f32 to vector<1x1xf32>
    %30 = arith.divf %28, %29 : vector<1x1xf32>
    %c0_19 = arith.constant 0 : index
    %c0_20 = arith.constant 0 : index
    %31 = vector.load %arg8[%c0_19, %c0_20] : memref<1x1xf32, #tpu.memory_space<vmem>>, vector<1x1xf32>
    tpu.vector_store %arg8[%c0_19, %c0_20], %30 {strides = array<i32>} : memref<1x1xf32, #tpu.memory_space<vmem>>, vector<1x1xf32>,
    return
  }
  func.func @transform_0(%arg0: i32) -> (i32, i32) {
    %c0_i32 = arith.constant 0 : i32
    %c0_i32_0 = arith.constant 0 : i32
    %c0_i32_1 = arith.constant 0 : i32
    return %c0_i32, %c0_i32_0 : i32, i32
  }
  func.func @transform_1(%arg0: i32) -> (i32, i32) {
    %c0_i32 = arith.constant 0 : i32
    %c0_i32_0 = arith.constant 0 : i32
    %c0_i32_1 = arith.constant 0 : i32
    return %c0_i32, %c0_i32_0 : i32, i32
  }
  func.func @transform_2(%arg0: i32) -> (i32, i32) {
    %c0_i32 = arith.constant 0 : i32
    %c0_i32_0 = arith.constant 0 : i32
    %c0_i32_1 = arith.constant 0 : i32
    return %c0_i32, %c0_i32_0 : i32, i32
  }
  func.func @transform_3(%arg0: i32) -> (i32, i32) {
    %c0_i32 = arith.constant 0 : i32
    %c0_i32_0 = arith.constant 0 : i32
    %c0_i32_1 = arith.constant 0 : i32
    return %c0_i32, %c0_i32_0 : i32, i32
  }
  func.func @transform_4(%arg0: i32) -> (i32, i32) {
    %c0_i32 = arith.constant 0 : i32
    %c0_i32_0 = arith.constant 0 : i32
    %c0_i32_1 = arith.constant 0 : i32
    return %c0_i32, %c0_i32_0 : i32, i32
  }
  func.func @transform_5(%arg0: i32) -> (i32, i32) {
    %c0_i32 = arith.constant 0 : i32
    %c0_i32_0 = arith.constant 0 : i32
    %c0_i32_1 = arith.constant 0 : i32
    return %c0_i32, %c0_i32_0 : i32, i32
  }
  func.func @transform_6(%arg0: i32) -> (i32, i32) {
    %c0_i32 = arith.constant 0 : i32
    %c0_i32_0 = arith.constant 0 : i32
    %c0_i32_1 = arith.constant 0 : i32
    return %c0_i32, %c0_i32_0 : i32, i32
  }
  func.func @transform_7(%arg0: i32) -> (i32, i32) {
    %c0_i32 = arith.constant 0 : i32
    %c0_i32_0 = arith.constant 0 : i32
    %c0_i32_1 = arith.constant 0 : i32
    return %c0_i32, %c0_i32_0 : i32, i32
  }
}

</mosaic_0001>

<bundles_post_ra>
// kernel: bert_baseline_forward.4
= control target key start
LH: loop header
LB: loop body
LE: loop exit
PB: predicated region body
PF: predicated region fallthrough
CT: control target
= control target key end

     0   :  { %v142_v4 = vmov 128.0   ;;  %s203_s0 = inlined_call_operand.vmem [shape: f32[32,128], index: 0, kind: input, shape index: {}]   ;;  %s204_s1 = inlined_call_operand.vmem [shape: f32[1,128], index: 1, kind: input, shape index: {}]   ;;  %s205_s2 = inlined_call_operand.vmem [shape: f32[1,128], index: 2, kind: input, shape index: {}]   ;;  %s206_s3 = inlined_call_operand.vmem [shape: f32[32,128], index: 3, kind: output, shape index: {}]  }
   0x1   :  { %v16_v0 = vld [vmem:[%s203_s0 + $0x10] sm:$0xff]  ;;  %v14_v1 = vld [vmem:[%s203_s0] sm:$0xff]  ;;  %v17_v2 = vld [vmem:[%s203_s0 + $0x18] sm:$0xff]  ;;  %132 = vrcp.f32 %v142_v4 }
   0x2   :  { %24 = vadd.xlane.f32.xlu1 %v16_v0  ;;  %20 = vadd.xlane.f32.xlu0 %v14_v1  ;;  %v15_v3 = vld [vmem:[%s203_s0 + $0x8] sm:$0xff]  ;;  %v130_v53 = vld [vmem:[%s204_s1] ss:$0 sm:$0xff] }
   0x3   :  { %v131_v58 = vld [vmem:[%s205_s2] ss:$0 sm:$0xff] }
   0x7   :  { %v133_v5 = vpop.eup %132 }
   0x8   :  { %v29_v6 = vmul.f32 128.0, %v133_v5  ;;  %vm33_vm0 = vweird.f32 %v133_v5 }
   0xa   :  { %26 = vadd.xlane.f32.xlu1 %v17_v2  ;;  %22 = vadd.xlane.f32.xlu0 %v15_v3  ;;  %v30_v7 = vsub.f32 1.0, %v29_v6 }
   0xc   :  { %v31_v8 = vmul.f32 %v133_v5, %v30_v7 }
   0xe   :  { %v32_v9 = vadd.f32 %v133_v5, %v31_v8 }
  0x10   :  { %v34_v10 = vsel %vm33_vm0, %v133_v5, %v32_v9 }
  0x75   :  { %v25_v11 = vpop.xlane.xlu1 %24  ;;  %v21_v12 = vpop.xlane.xlu0 %20 }
  0x76   :  { %v37_v13 = vmul.f32 %v34_v10, %v25_v11  ;;  %v35_v14 = vmul.f32 %v34_v10, %v21_v12 }
  0x78   :  { %v41_v15 = vsub.f32 %v16_v0, %v37_v13  ;;  %v39_v16 = vsub.f32 %v14_v1, %v35_v14 }
  0x7a   :  { %v45_v17 = vmul.f32 %v41_v15, %v41_v15  ;;  %v43_v18 = vmul.f32 %v39_v16, %v39_v16 }
  0x7c   :  { %51 = vadd.xlane.f32.xlu0 %v45_v17  ;;  %47 = vadd.xlane.f32.xlu2 %v43_v18 }
  0x7d   :  { %v27_v19 = vpop.xlane.xlu1 %26  ;;  %v23_v20 = vpop.xlane.xlu0 %22 }
  0x7e   :  { %v38_v21 = vmul.f32 %v34_v10, %v27_v19  ;;  %v36_v22 = vmul.f32 %v34_v10, %v23_v20 }
  0x80   :  { %v175_v23 = vsub.f32 %v17_v2, %v38_v21  ;;  %v177_v24 = vsub.f32 %v15_v3, %v36_v22 }
  0x82   :  { %v46_v25 = vmul.f32 %v175_v23, %v175_v23  ;;  %v44_v26 = vmul.f32 %v177_v24, %v177_v24 }
  0x84   :  { %53 = vadd.xlane.f32.xlu1 %v46_v25  ;;  %49 = vadd.xlane.f32.xlu2 %v44_v26 }
  0xef   :  { %v48_v27 = vpop.xlane.xlu2 %47  ;;  %v52_v28 = vpop.xlane.xlu0 %51 }
  0xf0   :  { %v55_v29 = vmul.f32 %v48_v27, %v34_v10  ;;  %v57_v30 = vmul.f32 %v52_v28, %v34_v10 }
  0xf2   :  { %v59_v31 = vadd.f32 1e-12, %v55_v29  ;;  %v61_v32 = vadd.f32 1e-12, %v57_v30 }
  0xf4   :  { %134 = vrsqrt.f32 %v59_v31  ;;  %vm69_vm3 = vweird.f32 %v59_v31  ;;  %vm89_vm5 = vweird.f32 %v61_v32 }
  0xf5   :  { %136 = vrsqrt.f32 %v61_v32 }
  0xf7   :  { %v54_v33 = vpop.xlane.xlu1 %53  ;;  %v50_v34 = vpop.xlane.xlu2 %49 }
  0xf8   :  { %v58_v35 = vmul.f32 %v54_v33, %v34_v10  ;;  %v56_v36 = vmul.f32 %v50_v34, %v34_v10 }
  0xfa   :  { %v135_v37 = vpop.eup %134  ;;  %v62_v38 = vadd.f32 1e-12, %v58_v35  ;;  %v60_v39 = vadd.f32 1e-12, %v56_v36 }
  0xfb   :  { %v137_v40 = vpop.eup %136  ;;  %v64_v41 = vmul.f32 %v135_v37, %v59_v31  ;;  %vm70_vm1 = vweird.f32 %v135_v37 }
  0xfc   :  { %v84_v42 = vmul.f32 %v137_v40, %v61_v32  ;;  %138 = vrsqrt.f32 %v62_v38  ;;  %vm90_vm2 = vweird.f32 %v137_v40  ;;  %vm71_vm4 = vmor %vm69_vm3, %vm70_vm1  ;;  %vm99_vm9 = vweird.f32 %v62_v38 }
  0xfd   :  { %v65_v43 = vmul.f32 %v135_v37, %v64_v41  ;;  %140 = vrsqrt.f32 %v60_v39  ;;  %vm91_vm6 = vmor %vm89_vm5, %vm90_vm2  ;;  %vm79_vm11 = vweird.f32 %v60_v39 }
  0xfe   :  { %v85_v44 = vmul.f32 %v137_v40, %v84_v42 }
  0xff   :  { %v66_v45 = vmul.f32 0.5, %v65_v43 }
 0x100   :  { %v86_v46 = vmul.f32 0.5, %v85_v44 }
 0x101   :  { %v67_v47 = vsub.f32 1.5, %v66_v45 }
 0x102   :  { %v139_v48 = vpop.eup %138  ;;  %v87_v49 = vsub.f32 1.5, %v86_v46 }
 0x103   :  { %v141_v50 = vpop.eup %140  ;;  %v68_v51 = vmul.f32 %v135_v37, %v67_v47  ;;  %v94_v52 = vmul.f32 %v139_v48, %v62_v38  ;;  %vm100_vm7 = vweird.f32 %v139_v48 }
 0x104   :  { %v88_v54 = vmul.f32 %v137_v40, %v87_v49  ;;  %v74_v55 = vmul.f32 %v141_v50, %v60_v39  ;;  %vm80_vm8 = vweird.f32 %v141_v50  ;;  %vm101_vm10 = vmor %vm99_vm9, %vm100_vm7 }
 0x105   :  { %v72_v56 = vsel %vm71_vm4, %v135_v37, %v68_v51  ;;  %v95_v57 = vmul.f32 %v139_v48, %v94_v52  ;;  %vm81_vm12 = vmor %vm79_vm11, %vm80_vm8 }
 0x106   :  { %v103_v59 = vmul.f32 %v72_v56, %v39_v16  ;;  %v92_v60 = vsel %vm91_vm6, %v137_v40, %v88_v54  ;;  %v75_v61 = vmul.f32 %v141_v50, %v74_v55 }
 0x107   :  { %v105_v62 = vmul.f32 %v92_v60, %v41_v15  ;;  %v96_v63 = vmul.f32 0.5, %v95_v57 }
 0x108   :  { %v110_v0 = vmul.f32 %v130_v53, %v103_v59  ;;  %v76_v1 = vmul.f32 0.5, %v75_v61 }
 0x109   :  { %v112_v2 = vmul.f32 %v130_v53, %v105_v62  ;;  %v97_v3 = vsub.f32 1.5, %v96_v63 }
 0x10a   :  { %v117_v4 = vadd.f32 %v131_v58, %v110_v0  ;;  %v77_v5 = vsub.f32 1.5, %v76_v1 }
 0x10b   :  { %v119_v6 = vadd.f32 %v131_v58, %v112_v2  ;;  %v98_v7 = vmul.f32 %v139_v48, %v97_v3 }
 0x10c   :  { %121 = vst [vmem:[%s206_s3] sm:$0xff] %v117_v4  ;;  %v78_v8 = vmul.f32 %v141_v50, %v77_v5 }
 0x10d   :  { %123 = vst [vmem:[%s206_s3 + $0x10] sm:$0xff] %v119_v6  ;;  %v102_v9 = vsel %vm101_vm10, %v139_v48, %v98_v7 }
 0x10e   :  { %v106_v10 = vmul.f32 %v102_v9, %v175_v23  ;;  %v82_v11 = vsel %vm81_vm12, %v141_v50, %v78_v8 }
 0x10f   :  { %v104_v12 = vmul.f32 %v82_v11, %v177_v24 }
 0x110   :  { %v113_v13 = vmul.f32 %v130_v53, %v106_v10 }
 0x111   :  { %v111_v14 = vmul.f32 %v130_v53, %v104_v12 }
 0x112   :  { %v120_v15 = vadd.f32 %v131_v58, %v113_v13 }
 0x113   :  { %v118_v16 = vadd.f32 %v131_v58, %v111_v14 }
 0x114   :  { %124 = vst [vmem:[%s206_s3 + $0x18] sm:$0xff] %v120_v15 }
 0x115   :  { %122 = vst [vmem:[%s206_s3 + $0x8] sm:$0xff] %v118_v16 }

// kernel: bert_baseline_forward.7
= control target key start
LH: loop header
LB: loop body
LE: loop exit
PB: predicated region body
PF: predicated region fallthrough
CT: control target
= control target key end

     0   :  { %13 = vsyncpa [#allocation3], 0  ;;  %s401_s0 = inlined_call_operand.vmem [shape: f32[2,128], index: 0, kind: input, shape index: {}]   ;;  %s402_s1 = inlined_call_operand.vmem [shape: f32[128,128], index: 1, kind: input, shape index: {}]   ;;  %s403_s2 = inlined_call_operand.vmem [shape: f32[1,128], index: 2, kind: input, shape index: {}]   ;;  %s404_s3 = inlined_call_operand.vmem [shape: f32[128,3], index: 3, kind: input, shape index: {}]   ;;  %s405_s4 = inlined_call_operand.vmem [shape: f32[1,3], index: 4, kind: input, shape index: {}]   ;;  %s406_s5 = inlined_call_operand.vmem [shape: f32[2,3], index: 5, kind: input, shape index: {}]   ;;  %s407_s6 = inlined_call_operand.hbm [shape: f32[2,3], index: 6, kind: output, shape index: {0}]   ;;  %s408_s7 = inlined_call_operand.hbm [shape: f32[1,1], index: 7, kind: output, shape index: {1}]  }
   0x1   :  { %v43_v0 = vld [vmem:[%s402_s1 + $0x78] sm:$0xff]  ;;  %v42_v1 = vld [vmem:[%s402_s1 + $0x70] sm:$0xff]  ;;  %v41_v2 = vld [vmem:[%s402_s1 + $0x68] sm:$0xff] }
   0x2   :  { %48 = vmatpush.msra.mxu0 %v43_v0  ;;  %v40_v3 = vld [vmem:[%s402_s1 + $0x60] sm:$0xff]  ;;  %v84_v4 = vld [vmem:[%s404_s3 + $0x78] sm:$0xff]  ;;  %v83_v6 = vld [vmem:[%s404_s3 + $0x70] sm:$0xff] }
   0x3   :  { %v39_v5 = vld [vmem:[%s402_s1 + $0x58] sm:$0xff]  ;;  %89 = vmatpush.msra.mxu1 %v84_v4  ;;  %v82_v7 = vld [vmem:[%s404_s3 + $0x68] sm:$0xff]  ;;  %v38_v8 = vld [vmem:[%s402_s1 + $0x50] sm:$0xff] }
   0x4   :  { %49 = vmatpush.msra.mxu0 %v42_v1  ;;  %v81_v9 = vld [vmem:[%s404_s3 + $0x60] sm:$0xff]  ;;  %v37_v10 = vld [vmem:[%s402_s1 + $0x48] sm:$0xff] }
   0x5   :  { %90 = vmatpush.msra.mxu1 %v83_v6 }
   0x6   :  { %50 = vmatpush.msra.mxu0 %v41_v2 }
   0x7   :  { %91 = vmatpush.msra.mxu1 %v82_v7 }
   0x8   :  { %51 = vmatpush.msra.mxu0 %v40_v3 }
   0xa   :  { %52 = vmatpush.msra.mxu0 %v39_v5 }
   0xb   :  { %14 = vsyncpa [#allocation5], 0  ;;  %v80_v11 = vld [vmem:[%s404_s3 + $0x58] sm:$0xff]  ;;  %v36_v12 = vld [vmem:[%s402_s1 + $0x40] sm:$0xff]  ;;  %92 = vmatpush.msra.mxu1 %v81_v9  ;;  %vm109_vm0 = vcmask 17408   ;;  %s244_s25 = smov [#allocation2]  }
   0xc   :  { %53 = vmatpush.msra.mxu0 %v38_v8  ;;  %v79_v13 = vld [vmem:[%s404_s3 + $0x50] sm:$0xff]  ;;  %v35_v14 = vld [vmem:[%s402_s1 + $0x38] sm:$0xff]  ;;  %v78_v15 = vld [vmem:[%s404_s3 + $0x48] sm:$0xff]  ;;  %v245_v49 = vmov 2.0   ;;  %vm129_vm1 = vcmask 1041408   ;;  %s165_s29 = sshll.u32 %s408_s7, 4  ;;  %s166_s29 = int_to_ptr.hbm [resolvable:$true] %s165_s29 }
   0xd   :  { %93 = vmatpush.msra.mxu1 %v80_v11  ;;  %v34_v16 = vld [vmem:[%s402_s1 + $0x30] sm:$0xff]  ;;  %v77_v17 = vld [vmem:[%s404_s3 + $0x40] sm:$0xff]  ;;  %v33_v18 = vld [vmem:[%s402_s1 + $0x28] sm:$0xff]  ;;  %vm145_vm3 = vcmask 0  }
   0xe   :  { %54 = vmatpush.msra.mxu0 %v37_v10  ;;  %v76_v19 = vld [vmem:[%s404_s3 + $0x38] sm:$0xff]  ;;  %v32_v20 = vld [vmem:[%s402_s1 + $0x20] sm:$0xff]  ;;  %v75_v21 = vld [vmem:[%s404_s3 + $0x30] sm:$0xff] }
   0xf   :  { %94 = vmatpush.msra.mxu1 %v79_v13  ;;  %v31_v22 = vld [vmem:[%s402_s1 + $0x18] sm:$0xff]  ;;  %v74_v23 = vld [vmem:[%s404_s3 + $0x28] sm:$0xff]  ;;  %v30_v24 = vld [vmem:[%s402_s1 + $0x10] sm:$0xff] }
  0x10   :  { %55 = vmatpush.msra.mxu0 %v36_v12  ;;  %v29_v25 = vld [vmem:[%s402_s1 + $0x8] sm:$0xff]  ;;  %v28_v26 = vld [vmem:[%s402_s1] sm:$0xff]  ;;  %v72_v29 = vld [vmem:[%s404_s3 + $0x18] sm:$0xff] }
  0x11   :  { %95 = vmatpush.msra.mxu1 %v78_v15  ;;  %v27_v27 = vld [vmem:[%s401_s0] sm:$0x3]  ;;  %v71_v30 = vld [vmem:[%s404_s3 + $0x10] sm:$0xff]  ;;  %v70_v31 = vld [vmem:[%s404_s3 + $0x8] sm:$0xff] }
  0x12   :  { %56 = vmatpush.msra.mxu0 %v35_v14  ;;  %v73_v28 = vld [vmem:[%s404_s3 + $0x20] sm:$0xff] }
  0x13   :  { %96 = vmatpush.msra.mxu1 %v77_v17  ;;  %v69_v32 = vld [vmem:[%s404_s3] sm:$0xff] }
  0x14   :  { %57 = vmatpush.msra.mxu0 %v34_v16  ;;  %v182_v33 = vld [vmem:[%s403_s2] ss:$0 sm:$0xff] }
  0x15   :  { %97 = vmatpush.msra.mxu1 %v76_v19  ;;  %v183_v37 = vld [vmem:[%s405_s4] ss:$0 sm:$0xff]  ;;  %s154_s4 = sshll.u32 %s407_s6, 4  ;;  %s246_s6 = smov [#allocation4]   ;;  %s155_s4 = int_to_ptr.hbm [resolvable:$true] %s154_s4 }
  0x16   :  { %58 = vmatpush.msra.mxu0 %v33_v18  ;;  %v123_v39 = vld [vmem:[%s406_s5] sm:$0x3]  ;;  %s152_s5 = sshll.u32 %s244_s25, 4  ;;  %s163_s26 = sshll.u32 %s246_s6, 4  ;;  %s153_s5 = int_to_ptr.vmem [resolvable:$true] %s152_s5  ;;  %s164_s26 = int_to_ptr.vmem [resolvable:$true] %s163_s26 }
  0x17   :  { %98 = vmatpush.msra.mxu1 %v75_v21 }
  0x18   :  { %59 = vmatpush.msra.mxu0 %v32_v20 }
  0x19   :  { %99 = vmatpush.msra.mxu1 %v74_v23 }
  0x1a   :  { %60 = vmatpush.msra.mxu0 %v31_v22 }
  0x1b   :  { %100 = vmatpush.msra.mxu1 %v73_v28 }
  0x1c   :  { %61 = vmatpush.msra.mxu0 %v30_v24 }
  0x1d   :  { %101 = vmatpush.msra.mxu1 %v72_v29 }
  0x1e   :  { %62 = vmatpush.msra.mxu0 %v29_v25 }
  0x1f   :  { %102 = vmatpush.msra.mxu1 %v71_v30 }
  0x20   :  { %63 = vmatpush.msra.mxu0 %v28_v26 }
  0x21   :  { %64 = vmatmul.f32.vlgmr.msra.gmra.mxu0 %v27_v27  ;;  %103 = vmatpush.msra.mxu1 %v70_v31 }
  0x23   :  { %104 = vmatpush.msra.mxu1 %v69_v32 }
  0x9e   :  { %v65_v34 = vpop.f32.mrf.mxu0 }
  0x9f   :  { %v66_v35 = vadd.f32 %v182_v33, %v65_v34 }
  0xa1   :  { %184 = vtanh.f32 %v66_v35 }
  0xa7   :  { %v185_v36 = vpop.eup %184 }
  0xa8   :  { %105 = vmatmul.f32.vlgmr.msra.gmra.mxu1 %v185_v36 }
 0x125   :  { %v106_v38 = vpop.f32.mrf.mxu1 }
 0x126   :  { %v107_v40 = vadd.f32 %v183_v37, %v106_v38 }
 0x128   :  { %v111_v41 = vsel %vm109_vm0, %v107_v40, -inf  ;;  %110 = vst.msk [vmem:[#allocation2] sm:$0x3] %vm109_vm0, %v107_v40  ;;  %v124_v42 = vmul.f32 %v123_v39, %v107_v40 }
 0x129   :  { %112 = vmax.xlane.f32.xlu0 %v111_v41  ;;  %157 = dma.vmem_to_hbm [thread:$0]  %s153_s5, 32, %s155_s4, [#allocation3]  }
 0x12a   :  { %v125_v43 = vsel %vm109_vm0, %v124_v42, 0.0 }
 0x12b   :  { %126 = vadd.xlane.f32.xlu1 %v125_v43 }
 0x19c   :  { %v113_v44 = vpop.xlane.xlu0 %112 }
 0x19d   :  { %v114_v45 = vsub.f32 %v107_v40, %v113_v44 }
 0x19e   :  { %v127_v56 = vpop.xlane.xlu1 %126 }
 0x19f   :  { %v115_v46 = vmul.f32 1.442695, %v114_v45 }
 0x1a1   :  { %186 = vpow2.f32 %v115_v46 }
 0x1a2   :  { %188 = vrcp.f32 %v245_v49 }
 0x1a7   :  { %v187_v47 = vpop.eup %186 }
 0x1a8   :  { %v117_v48 = vsel %vm109_vm0, %v187_v47, 0.0  ;;  %v189_v51 = vpop.eup %188 }
 0x1a9   :  { %118 = vadd.xlane.f32.xlu0 %v117_v48  ;;  %v138_v54 = vmul.f32 2.0, %v189_v51  ;;  %vm142_vm2 = vweird.f32 %v189_v51 }
 0x1ab   :  { %v139_v58 = vsub.f32 1.0, %v138_v54 }
 0x1ad   :  { %v140_v61 = vmul.f32 %v189_v51, %v139_v58 }
 0x1af   :  { %v141_v0 = vadd.f32 %v189_v51, %v140_v61 }
 0x1b1   :  { %v143_v3 = vsel %vm142_vm2, %v189_v51, %v141_v0 }
 0x21c   :  { %v119_v50 = vpop.xlane.xlu0 %118 }
 0x21d   :  { %190 = vlog2.f32 %v119_v50 }
 0x223   :  { %v191_v52 = vpop.eup %190 }
 0x224   :  { %v121_v53 = vmul.f32 0.6931472, %v191_v52 }
 0x226   :  { %v122_v55 = vadd.f32 %v121_v53, %v113_v44 }
 0x228   :  { %v128_v57 = vsub.f32 %v122_v55, %v127_v56 }
 0x22a   :  { %v130_v59 = vsel %vm129_vm1, %v128_v57, 0.0 }
 0x22b   :  { %v131_v60 = vrot.slane %v130_v59, 4 }
 0x22d   :  { %v132_v62 = vadd.f32 %v131_v60, %v130_v59 }
 0x22f   :  { %v133_v63 = vrot.slane %v132_v62, 2 }
 0x231   :  { %v134_v1 = vadd.f32 %v133_v63, %v132_v62 }
 0x233   :  { %v135_v2 = vrot.slane %v134_v1, 1 }
 0x235   :  { %v136_v4 = vadd.f32 %v135_v2, %v134_v1 }
 0x237   :  { %v144_v5 = vmul.f32 %v143_v3, %v136_v4 }
 0x239   :  { %146 = vst.msk [vmem:[#allocation4] sm:$0x1] %vm145_vm3, %v144_v5 }
 0x23a   :  { %168 = dma.vmem_to_hbm [thread:$0]  %s164_s26, 16, %s166_s29, [#allocation5]  }
 0x23b   :  { %240 = dma.done.wait [#allocation3], 32  }
 0x23c   :  { %241 = vsyncadd [#allocation3], 4294967264 }
 0x23d   :  { %242 = dma.done.wait [#allocation5], 16  }
 0x23e   :  { %243 = vsyncadd [#allocation5], 4294967280 }
 0x23f   :  { %177 = vsyncpa [#allocation3], 1 }
 0x240   :  { %178 = vsyncpa [#allocation5], 1 }

// kernel: bert_baseline_forward.5
= control target key start
LH: loop header
LB: loop body
LE: loop exit
PB: predicated region body
PF: predicated region fallthrough
CT: control target
= control target key end

     0   :  { %s4569_s0 = inlined_call_operand.vmem [shape: f32[32,128], index: 0, kind: input, shape index: {}]   ;;  %s4570_s1 = inlined_call_operand.vmem [shape: f32[2,1,16], index: 1, kind: input, shape index: {}]   ;;  %s4571_s2 = inlined_call_operand.vmem [shape: bf16[12,128,32], index: 2, kind: input, shape index: {}]   ;;  %s4572_s3 = inlined_call_operand.vmem [shape: f32[12,1,32], index: 3, kind: input, shape index: {}]   ;;  %s4573_s4 = inlined_call_operand.vmem [shape: bf16[4,32,128], index: 4, kind: input, shape index: {}]   ;;  %s4574_s5 = inlined_call_operand.vmem [shape: f32[1,128], index: 5, kind: input, shape index: {}]   ;;  %s4575_s6 = inlined_call_operand.vmem [shape: f32[1,128], index: 6, kind: input, shape index: {}]   ;;  %s4576_s7 = inlined_call_operand.vmem [shape: f32[1,128], index: 7, kind: input, shape index: {}]   ;;  %s4577_s8 = inlined_call_operand.vmem [shape: bf16[128,256], index: 8, kind: input, shape index: {}]   ;;  %s4578_s9 = inlined_call_operand.vmem [shape: f32[1,256], index: 9, kind: input, shape index: {}]   ;;  %s4579_s10 = inlined_call_operand.vmem [shape: bf16[256,128], index: 10, kind: input, shape index: {}]   ;;  %s4580_s11 = inlined_call_operand.vmem [shape: f32[1,128], index: 11, kind: input, shape index: {}]   ;;  %s4581_s12 = inlined_call_operand.vmem [shape: f32[1,128], index: 12, kind: input, shape index: {}]   ;;  %s4582_s13 = inlined_call_operand.vmem [shape: f32[1,128], index: 13, kind: input, shape index: {}]   ;;  %s4583_s14 = inlined_call_operand.vmem [shape: f32[32,128], index: 14, kind: output, shape index: {0}]   ;;  %s4584_s15 = inlined_call_operand.hbm [shape: f32[2,4,16,16], index: 15, kind: output, shape index: {1}]  }
   0x1   :  { %4592 = sst [smem:[#allocation11_spill]] %s4569_s0 }
   0x2   :  { %4593 = sst [smem:[#allocation12_spill]] %s4570_s1 }
   0x3   :  { %4594 = sst [smem:[#allocation13_spill]] %s4583_s14 }
   0x4   :  { %21 = vsyncpa [#allocation3], 0 }
   0x5   :  { %23 = vsyncpa [#allocation3 + $0x1], 0  ;;  %s3812_s18 = smov 0   ;;  %s3814_s19 = smov 0  }
   0x6   :  { %s3816_s20 = smov 0   ;;  %s3818_s21 = smov 0  }
   0x7 LB: > { %4595 = sst [smem:[#allocation5_spill]] %s3715_s18  ;;  %s3833_s22 = sadd.s32 4294967295, %s3727_s21   ;;  %s3727_s21 = sphi %s3818_s21, %s4610_s21   ;;  %s3723_s20 = sphi %s3816_s20, %s4612_s20   ;;  %s3719_s19 = sphi %s3814_s19, %s4614_s19   ;;  %s3715_s18 = sphi %s3812_s18, %s4613_s18  }
   0x8   : > { %4596 = sst [smem:[#allocation6_spill]] %s3723_s20  ;;  %s2626_s23 = sadd.s32 4294967294, %s3727_s21  }
   0x9   : > { %4597 = sst [smem:[#allocation7_spill]] %s3727_s21  ;;  %s3837_s24 = sadd.s32 1, %s3727_s21  }
   0xa   : > { %4598 = sst [smem:[#allocation8_spill]] %s3837_s24  ;;  %s366_s25 = sadd.s32 1, %s3723_s20 }
   0xb   : > { %s363_s26 = ssub.s32 %s3727_s21, %s3837_s24  ;;  %p376_p0 = scmp.ne.s32.totalorder %s3723_s20, %s3719_s19 }
   0xc   : > { %p364_p1 = scmp.eq.s32.totalorder %s363_s26, 0  ;;  %p377_p2 = scmp.eq.s32.totalorder %s3833_s22, 1 }
   0xd   : > { %p382_p3 = scmp.ne.s32.totalorder %s3719_s19, %s3715_s18  ;;  %p383_p4 = scmp.eq.s32.totalorder %s2626_s23, 1 }
   0xe   : > { %s3848_s27 = scalar_select %p364_p1, %s3723_s20, %s366_s25  }
   0xf   : > { %p3850_p5 = por %p377_p2, %p376_p0  ;;  %p3854_p6 = por %p383_p4, %p382_p3 }
  0x10   : > { %4599 = sst [smem:[#allocation9_spill]] %s3848_s27  ;;  %p2629_p7 = scmp.ge.s32.totalorder %s3727_s21, 1 }
  0x11   : > { %s4601_s29 = scalar_select %p3854_p6, 1, 0 }
  0x12   : > { %p452_p8 = scmp.lt.s32.totalorder %s3727_s21, 3 }
  0x13   : > { %4602 = sst [smem:[#allocation10_spill]] %s4601_s29 }
  0x14   : > { %p453_p9 = pnand %p2629_p7, %p452_p8 }
  0x15   : > { %s2631_s17 = sshll.u32 (!%p453_p9), %s3833_s22, 1  ;;  %s4603_s0 = sld [smem:[#allocation11_spill]] (!%p453_p9) }
  0x16   : > { %456 = sbr.rel (%p453_p9) target bundleno = 3339 (0xd0b), region = 76  ;;  %p509_p10 = scmp.lt.s32.totalorder (!%p453_p9), %s2631_s17, 3 }
  0x17   : > { %p514_p11 = scmp.lt.s32.totalorder (!%p453_p9), %s3833_s22, 1  ;;  %s4604_s1 = sld [smem:[#allocation12_spill]] (!%p453_p9) }
  0x18   : > { %s505_s20 = sand.u32 (!%p453_p9), 1, %s3719_s19  }
  0x1b   : > { %v3432_v0 = vld [vmem:[%s4571_s2 + $0x138] sm:$0xff]  ;;  %v3431_v2 = vld [vmem:[%s4571_s2 + $0x130] sm:$0xff]  ;;  %v3430_v4 = vld [vmem:[%s4571_s2 + $0x128] sm:$0xff]  ;;  %s4616_s17 = smov (!%p509_p10, %s2631_s17), 3  ;;  %vm778_vm0 = vcmask 261120   ;;  %vm821_vm1 = vcmask 130048  }
  0x1c   : > { %v3424_v1 = vld [vmem:[%s4571_s2 + $0x38] sm:$0xff]  ;;  %680 = vmatpush.bf16.msra.mxu1 %v3432_v0  ;;  %v3423_v3 = vld [vmem:[%s4571_s2 + $0x30] sm:$0xff]  ;;  %v3422_v5 = vld [vmem:[%s4571_s2 + $0x28] sm:$0xff]  ;;  %s4591_s25 = sshll.u32 %s4616_s17, 3 }
  0x1d   : > { %596 = vmatpush.bf16.msra.mxu0 %v3424_v1  ;;  %v3429_v6 = vld [vmem:[%s4571_s2 + $0x120] sm:$0xff]  ;;  %v3428_v8 = vld [vmem:[%s4571_s2 + $0x118] sm:$0xff]  ;;  %v3427_v10 = vld [vmem:[%s4571_s2 + $0x110] sm:$0xff]  ;;  %s512_s30 = scalar_lea.vmem %s4603_s0, %s4591_s25  ;;  %s3553_s25 = sshll.u32 %s3833_s22, 6 }
  0x1e   : > { %v3421_v7 = vld [vmem:[%s4571_s2 + $0x20] sm:$0xff]  ;;  %v3420_v9 = vld [vmem:[%s4571_s2 + $0x18] sm:$0xff]  ;;  %v3419_v11 = vld [vmem:[%s4571_s2 + $0x10] sm:$0xff]  ;;  %s515_s24 = scalar_select %p514_p11, %s3833_s22, 1 }
  0x1f   : > { %v3426_v12 = vld [vmem:[%s4571_s2 + $0x108] sm:$0xff]  ;;  %v3425_v14 = vld [vmem:[%s4571_s2 + $0x100] sm:$0xff]  ;;  %v3440_v29 = vld [vmem:[%s4571_s2 + $0x238] sm:$0xff]  ;;  %s3685_s22 = scalar_lea.hbm %s4584_s15, 128 }
  0x20   : > { %681 = vmatpush.bf16.msra.mxu1 %v3431_v2  ;;  %v3418_v13 = vld [vmem:[%s4571_s2 + $0x8] sm:$0xff]  ;;  %v3914_v15 = vld [vmem:[%s512_s30] sm:$0xff]  ;;  %s516_s18 = scalar_lea.vmem %s4604_s1, %s515_s24  ;;  %764 = vmatpush.bf16.msra.mxu2 %v3440_v29  ;;  %v3439_v30 = vld [vmem:[%s4571_s2 + $0x230] sm:$0xff]  ;;  %s2630_s24 = sshll.u32 %s505_s20, 6 }
  0x21   : > { %597 = vmatpush.bf16.msra.mxu0 %v3423_v3  ;;  %v3916_v16 = vld [vmem:[%s512_s30 + $0x8] sm:$0xff]  ;;  %v3417_v17 = vld [vmem:[%s4571_s2] sm:$0xff]  ;;  %v3436_v33 = vld [vmem:[%s4571_s2 + $0x218] sm:$0xff]  ;;  %s4030_s27 = scalar_lea.vmem [#allocation2], %s2630_s24  ;;  %s2511_s24 = scalar_lea.sflag [#allocation3], %s505_s20 }
  0x22   : > { %v3923_v18 = vpack.c.bf16 %v3916_v16, %v3914_v15  ;;  %v3596_v20 = vld [vmem:[%s4572_s3 + $0x4] ss:$0 sm:$0xff]  ;;  %v3597_v23 = vld [vmem:[%s4572_s3] ss:$0 sm:$0xff]  ;;  %v3438_v31 = vld [vmem:[%s4571_s2 + $0x228] sm:$0xff]  ;;  %s2527_s21 = sshll.u32 %s4030_s27, 4  ;;  %s2528_s21 = int_to_ptr.vmem [resolvable:$true] %s2527_s21 }
  0x23   : > { %v3437_v32 = vld [vmem:[%s4571_s2 + $0x220] sm:$0xff]  ;;  %v3435_v36 = vld [vmem:[%s4571_s2 + $0x210] sm:$0xff]  ;;  %v3434_v39 = vld [vmem:[%s4571_s2 + $0x208] sm:$0xff] }
  0x24   : > { %682 = vmatpush.bf16.msra.mxu1 %v3430_v4  ;;  %765 = vmatpush.bf16.msra.mxu2 %v3439_v30  ;;  %v3957_v34 = vld [vmem:[%s516_s18] ss:$0 sm:$0xff]  ;;  %v3458_v46 = vld [vmem:[%s4571_s2 + $0x178] sm:$0xff]  ;;  %v3457_v47 = vld [vmem:[%s4571_s2 + $0x170] sm:$0xff]  ;;  %s2526_s18 = scalar_lea.hbm %s4584_s15, %s3553_s25 }
  0x25   : > { %598 = vmatpush.bf16.msra.mxu0 %v3422_v5  ;;  %v3433_v42 = vld [vmem:[%s4571_s2 + $0x200] sm:$0xff]  ;;  %v3456_v51 = vld [vmem:[%s4571_s2 + $0x168] sm:$0xff]  ;;  %v3454_v55 = vld [vmem:[%s4571_s2 + $0x158] sm:$0xff]  ;;  %s2529_s26 = sshll.u32 %s2526_s18, 4  ;;  %s2530_s26 = int_to_ptr.hbm [resolvable:$true] %s2529_s26 }
  0x26   : > { %v3455_v52 = vld [vmem:[%s4571_s2 + $0x160] sm:$0xff]  ;;  %v3453_v59 = vld [vmem:[%s4571_s2 + $0x150] sm:$0xff]  ;;  %v3452_v60 = vld [vmem:[%s4571_s2 + $0x148] sm:$0xff]  ;;  %s3679_s29 = sshra.s32 %s2530_s26, 4  ;;  %s3680_s29 = int_to_ptr.hbm [resolvable:$true] %s3679_s29 }
  0x27   : > { %v3599_v0 = vld [vmem:[%s4572_s3 + $0x8] ss:$0 sm:$0xff]  ;;  %v3450_v4 = vld [vmem:[%s4571_s2 + $0x78] sm:$0xff]  ;;  %v3449_v5 = vld [vmem:[%s4571_s2 + $0x70] sm:$0xff]  ;;  %s3681_s30 = scalar_lea.hbm %s3680_s29, 64  ;;  %p3686_p1 = scmp.lt.s32.totalorder %s3680_s29, %s4584_s15 }
  0x28   : > { %683 = vmatpush.bf16.msra.mxu1 %v3429_v6  ;;  %766 = vmatpush.bf16.msra.mxu2 %v3438_v31  ;;  %v3451_v6 = vld [vmem:[%s4571_s2 + $0x140] sm:$0xff]  ;;  %p3682_p12 = scmp.ne.s32.totalorder %s3680_s29, %s3681_s30  ;;  %p3687_p2 = scmp.lt.s32.totalorder %s3685_s22, %s3681_s30 }
  0x29   : > { %599 = vmatpush.bf16.msra.mxu0 %v3421_v7  ;;  %v3448_v7 = vld [vmem:[%s4571_s2 + $0x68] sm:$0xff] }
  0x2a   : > { %p3683_p13 = pnand %p3682_p12, %p3850_p5  ;;  %p3688_p3 = por %p3687_p2, %p3686_p1 }
  0x2c   : > { %684 = vmatpush.bf16.msra.mxu1 %v3428_v8  ;;  %767 = vmatpush.bf16.msra.mxu2 %v3437_v32  ;;  %v3447_v8 = vld [vmem:[%s4571_s2 + $0x60] sm:$0xff]  ;;  %p3684_p0 = pneg %p3683_p13 }
  0x2d   : > { %600 = vmatpush.bf16.msra.mxu0 %v3420_v9  ;;  %v3446_v9 = vld [vmem:[%s4571_s2 + $0x58] sm:$0xff]  ;;  %v3601_v32 = vld [vmem:[%s4572_s3 + $0x1] ss:$0 sm:$0xff] }
  0x2e   : > { %p3689_p4 = pnand %p3688_p3, %p3684_p0 }
  0x30   : > { %685 = vmatpush.bf16.msra.mxu1 %v3427_v10  ;;  %768 = vmatpush.bf16.msra.mxu2 %v3436_v33  ;;  %v3445_v10 = vld [vmem:[%s4571_s2 + $0x50] sm:$0xff] }
  0x31   : > { %601 = vmatpush.bf16.msra.mxu0 %v3419_v11  ;;  %v3444_v11 = vld [vmem:[%s4571_s2 + $0x48] sm:$0xff] }
  0x34   : > { %686 = vmatpush.bf16.msra.mxu1 %v3426_v12  ;;  %769 = vmatpush.bf16.msra.mxu2 %v3435_v36  ;;  %v3443_v12 = vld [vmem:[%s4571_s2 + $0x40] sm:$0xff] }
  0x35   : > { %602 = vmatpush.bf16.msra.mxu0 %v3418_v13 }
  0x38   : > { %687 = vmatpush.bf16.msra.mxu1 %v3425_v14  ;;  %770 = vmatpush.bf16.msra.mxu2 %v3434_v39  ;;  %v3465_v39 = vld [vmem:[%s4571_s2 + $0x270] sm:$0xff] }
  0x39   : > { %603 = vmatpush.bf16.msra.mxu0 %v3417_v17 }
  0x3b   : > { %688 = vmatmul.bf16.vlgmr.msra.gmra.mxu1 %v3923_v18 }
  0x3c   : > { %604 = vmatmul.bf16.vlgmr.msra.gmra.mxu0 %v3923_v18  ;;  %771 = vmatpush.bf16.msra.mxu2 %v3433_v42  ;;  %v3462_v42 = vld [vmem:[%s4571_s2 + $0x258] sm:$0xff] }
  0x3d   : > { %1034 = vmatpush.bf16.msrb.mxu0 %v3458_v46 }
  0x3f   : > { %772 = vmatmul.bf16.vlgmr.msra.gmra.mxu2 %v3923_v18 }
  0x41   : > { %1035 = vmatpush.bf16.msrb.mxu0 %v3457_v47  ;;  %v3460_v47 = vld [vmem:[%s4571_s2 + $0x248] sm:$0xff] }
  0x45   : > { %1036 = vmatpush.bf16.msrb.mxu0 %v3456_v51 }
  0x49   : > { %1037 = vmatpush.bf16.msrb.mxu0 %v3455_v52 }
  0x4d   : > { %1038 = vmatpush.bf16.msrb.mxu0 %v3454_v55 }
  0x51   : > { %1039 = vmatpush.bf16.msrb.mxu0 %v3453_v59 }
  0x55   : > { %1040 = vmatpush.bf16.msrb.mxu0 %v3452_v60 }
  0x59   : > { %1041 = vmatpush.bf16.msrb.mxu0 %v3451_v6  ;;  %v3483_v6 = vld [vmem:[%s4571_s2 + $0x1b0] sm:$0xff] }
  0x5c   : > { %1042 = vmatmul.bf16.vlgmr.msrb.gmra.mxu0 %v3923_v18 }
  0xb8   : > { %v689_v19 = vpop.f32.mrf.mxu1 }
  0xb9   : > { %v605_v24 = vpop.f32.mrf.mxu0  ;;  %v690_v25 = vadd.f32 %v3596_v20, %v689_v19 }
  0xba   : > { %v606_v26 = vadd.f32 %v3597_v23, %v605_v24 }
  0xc0   : > { %v691_v21 = vpop.f32.mrf.mxu1 }
  0xc1   : > { %v692_v22 = vadd.f32 %v3596_v20, %v691_v21  ;;  %v607_v27 = vpop.f32.mrf.mxu0 }
  0xc2   : > { %v608_v28 = vadd.f32 %v3597_v23, %v607_v27  ;;  %v773_v63 = vpop.f32.mrf.mxu2  ;;  %v3600_v23 = vld [vmem:[%s4572_s3 + $0x5] ss:$0 sm:$0xff]  ;;  %v3442_v27 = vld [vmem:[%s4573_s4 + $0x8] sm:$0xff] }
  0xc3   : > { %2765 = vmatpush.xpose.msk.msra.mxu3 %vm778_vm0, %v692_v22  ;;  %v774_v2 = vadd.f32 %v3599_v0, %v773_v63  ;;  %1281 = vmatpush.bf16.msra.mxu0 %v3442_v27 }
  0xc7   : > { %2766 = vmatpush.xpose.msk.msra.mxu3 %vm778_vm0, %v690_v25 }
  0xca   : > { %2767 = vmatmul.msk.f32.vlgmr.msra.gmra.mxu3 %vm778_vm0, %v606_v26  ;;  %v775_v1 = vpop.f32.mrf.mxu2 }
  0xcb   : > { %v776_v3 = vadd.f32 %v3599_v0, %v775_v1  ;;  %v3602_v1 = vld [vmem:[%s4572_s3 + $0x9] ss:$0 sm:$0xff] }
  0xcd   : > { %866 = vmatpush.msrb.mxu3 %v776_v3 }
  0xcf   : > { %867 = vmatpush.msrb.mxu3 %v774_v2 }
  0xd1   : > { %950 = vmatpush.bf16.msra.mxu3 %v3450_v4 }
  0xd2   : > { %2768 = vmatmul.msk.f32.gmra.mxu3 %vm778_vm0, %v608_v28  ;;  %v3441_v28 = vld [vmem:[%s4573_s4] sm:$0xff] }
  0xd3   : > { %1282 = vmatpush.bf16.msra.mxu0 %v3441_v28 }
  0xd5   : > { %951 = vmatpush.bf16.msra.mxu3 %v3449_v5  ;;  %v3484_v5 = vld [vmem:[%s4571_s2 + $0x1b8] sm:$0xff] }
  0xd9   : > { %952 = vmatpush.bf16.msra.mxu3 %v3448_v7  ;;  %v1043_v22 = vpop.f32.mrf.mxu0  ;;  %v3482_v7 = vld [vmem:[%s4571_s2 + $0x1a8] sm:$0xff] }
  0xda   : > { %v1044_v26 = vadd.f32 %v3600_v23, %v1043_v22  ;;  %v3470_v22 = vld [vmem:[%s4571_s2 + $0x88] sm:$0xff] }
  0xdd   : > { %953 = vmatpush.bf16.msra.mxu3 %v3447_v8  ;;  %v3481_v8 = vld [vmem:[%s4571_s2 + $0x1a0] sm:$0xff] }
  0xe1   : > { %954 = vmatpush.bf16.msra.mxu3 %v3446_v9  ;;  %v1045_v24 = vpop.f32.mrf.mxu0  ;;  %v3476_v9 = vld [vmem:[%s4571_s2 + $0xb8] sm:$0xff] }
  0xe2   : > { %v1046_v25 = vadd.f32 %v3600_v23, %v1045_v24  ;;  %v3469_v24 = vld [vmem:[%s4571_s2 + $0x80] sm:$0xff] }
  0xe4   : > { %2918 = vmatpush.xpose.msk.msrb.mxu2 %vm778_vm0, %v1046_v25 }
  0xe5   : > { %955 = vmatpush.bf16.msra.mxu3 %v3445_v10  ;;  %v3480_v10 = vld [vmem:[%s4571_s2 + $0x198] sm:$0xff] }
  0xe8   : > { %2919 = vmatpush.xpose.msk.msrb.mxu2 %vm778_vm0, %v1044_v26 }
  0xe9   : > { %956 = vmatpush.bf16.msra.mxu3 %v3444_v11  ;;  %v3475_v11 = vld [vmem:[%s4571_s2 + $0xb0] sm:$0xff] }
  0xed   : > { %957 = vmatpush.bf16.msra.mxu3 %v3443_v12  ;;  %v3479_v12 = vld [vmem:[%s4571_s2 + $0x190] sm:$0xff] }
 0x14d   : > { %v808_v35 = vpop.f32.mrf.mxu3 }
 0x14e   : > { %v814_v37 = vmul.f32 0.17677669, %v808_v35 }
 0x150   : > { %v819_v38 = vadd.f32 %v3957_v34, %v814_v37 }
 0x152   : > { %v822_v40 = vsel %vm821_vm1, %v819_v38, -inf }
 0x153   : > { %823 = vmax.xlane.f32.xlu0 %v822_v40  ;;  %v3464_v40 = vld [vmem:[%s4571_s2 + $0x268] sm:$0xff] }
 0x155   : > { %v811_v41 = vpop.f32.mrf.mxu3 }
 0x156   : > { %v815_v43 = vmul.f32 0.17677669, %v811_v41  ;;  %v3463_v41 = vld [vmem:[%s4571_s2 + $0x260] sm:$0xff] }
 0x158   : > { %v820_v44 = vadd.f32 %v3957_v34, %v815_v43 }
 0x15a   : > { %v825_v45 = vsel %vm821_vm1, %v820_v44, -inf }
 0x15b   : > { %826 = vmax.xlane.f32.xlu0 %v825_v45 }
 0x1c6   : > { %v824_v48 = vpop.xlane.xlu0 %823 }
 0x1c7   : > { %v828_v49 = vsub.f32 %v819_v38, %v824_v48  ;;  %v3466_v38 = vld [vmem:[%s4571_s2 + $0x278] sm:$0xff] }
 0x1c8   : > { %1118 = vmatpush.bf16.msrb.mxu1 %v3466_v38 }
 0x1c9   : > { %v830_v50 = vmul.f32 1.442695, %v828_v49 }
 0x1cb   : > { %3615 = vpow2.f32 %v830_v50  ;;  %v3459_v50 = vld [vmem:[%s4571_s2 + $0x240] sm:$0xff] }
 0x1cc   : > { %1119 = vmatpush.bf16.msrb.mxu1 %v3465_v39 }
 0x1ce   : > { %v827_v53 = vpop.xlane.xlu0 %826 }
 0x1cf   : > { %v829_v54 = vsub.f32 %v820_v44, %v827_v53  ;;  %v3461_v44 = vld [vmem:[%s4571_s2 + $0x250] sm:$0xff] }
 0x1d0   : > { %1120 = vmatpush.bf16.msrb.mxu1 %v3464_v40  ;;  %v3604_v40 = vld [vmem:[%s4572_s3 + $0x2] ss:$0 sm:$0xff] }
 0x1d1   : > { %v3616_v56 = vpop.eup %3615  ;;  %v832_v57 = vmul.f32 1.442695, %v829_v54 }
 0x1d2   : > { %v834_v58 = vsel %vm821_vm1, %v3616_v56, 0.0 }
 0x1d3   : > { %3617 = vpow2.f32 %v832_v57  ;;  %835 = vadd.xlane.f32.xlu1 %v834_v58 }
 0x1d4   : > { %1121 = vmatpush.bf16.msrb.mxu1 %v3463_v41 }
 0x1d8   : > { %1122 = vmatpush.bf16.msrb.mxu1 %v3462_v42 }
 0x1d9   : > { %v3618_v61 = vpop.eup %3617 }
 0x1da   : > { %v837_v62 = vsel %vm821_vm1, %v3618_v61, 0.0 }
 0x1db   : > { %838 = vadd.xlane.f32.xlu1 %v837_v62 }
 0x1dc   : > { %1123 = vmatpush.bf16.msrb.mxu1 %v3461_v44 }
 0x1e0   : > { %1124 = vmatpush.bf16.msrb.mxu1 %v3460_v47  ;;  %v3492_v47 = vld [vmem:[%s4571_s2 + $0x2b8] sm:$0xff] }
 0x1e4   : > { %1125 = vmatpush.bf16.msrb.mxu1 %v3459_v50 }
 0x1e7   : > { %1126 = vmatmul.bf16.vlgmr.msrb.gmra.mxu1 %v3923_v18 }
 0x1e8   : > { %1359 = vmatpush.bf16.msra.mxu1 %v3476_v9 }
 0x1ec   : > { %1360 = vmatpush.bf16.msra.mxu1 %v3475_v11 }
 0x246   : > { %v836_v13 = vpop.xlane.xlu1 %835 }
 0x247   : > { %3619 = vrcp.f32 %v836_v13  ;;  %v3474_v13 = vld [vmem:[%s4571_s2 + $0xa8] sm:$0xff] }
 0x248   : > { %1361 = vmatpush.bf16.msra.mxu1 %v3474_v13 }
 0x24d   : > { %v3620_v14 = vpop.eup %3619 }
 0x24e   : > { %v839_v17 = vpop.xlane.xlu1 %838  ;;  %v842_v19 = vmul.f32 %v3620_v14, %v3616_v56  ;;  %v3478_v14 = vld [vmem:[%s4571_s2 + $0x188] sm:$0xff] }
 0x24f   : > { %3621 = vrcp.f32 %v839_v17  ;;  %v3473_v17 = vld [vmem:[%s4571_s2 + $0xa0] sm:$0xff] }
 0x250   : > { %844 = vst.msk [vmem:[%s4030_s27] sm:$0xff] %vm821_vm1, %v842_v19  ;;  %2769 = vmatmul.msk.f32.vlgmr.msrb.gmra.mxu3 %vm821_vm1, %v842_v19  ;;  %v3477_v19 = vld [vmem:[%s4571_s2 + $0x180] sm:$0xff]  ;;  %1362 = vmatpush.bf16.msra.mxu1 %v3473_v17  ;;  %v3504_v17 = vld [vmem:[%s4571_s2 + $0x1c8] sm:$0xff] }
 0x255   : > { %v3622_v20 = vpop.eup %3621 }
 0x256   : > { %v843_v21 = vmul.f32 %v3622_v20, %v3618_v61  ;;  %v3472_v20 = vld [vmem:[%s4571_s2 + $0x98] sm:$0xff] }
 0x257   : > { %1363 = vmatpush.bf16.msra.mxu1 %v3472_v20  ;;  %v3503_v20 = vld [vmem:[%s4571_s2 + $0x1c0] sm:$0xff] }
 0x258   : > { %845 = vst.msk [vmem:[%s4030_s27 + $0x8] sm:$0xff] %vm821_vm1, %v843_v21  ;;  %2770 = vmatmul.msk.f32.gmra.mxu3 %vm821_vm1, %v843_v21  ;;  %v3471_v21 = vld [vmem:[%s4571_s2 + $0x90] sm:$0xff] }
 0x25b   : > { %1364 = vmatpush.bf16.msra.mxu1 %v3471_v21 }
 0x25f   : > { %1365 = vmatpush.bf16.msra.mxu1 %v3470_v22 }
 0x260   : > { %958 = vmatmul.bf16.vlgmr.msra.gmra.mxu3 %v3923_v18 }
 0x263   : > { %1366 = vmatpush.bf16.msra.mxu1 %v3469_v24 }
 0x264   : > { %v1127_v63 = vpop.f32.mrf.mxu1 }
 0x265   : > { %v1128_v3 = vadd.f32 %v3602_v1, %v1127_v63 }
 0x266   : > { %1367 = vmatmul.bf16.vlgmr.msra.gmra.mxu1 %v3923_v18 }
 0x26c   : > { %v1129_v2 = vpop.f32.mrf.mxu1 }
 0x26d   : > { %v1130_v4 = vadd.f32 %v3602_v1, %v1129_v2  ;;  %v3509_v1 = vld [vmem:[%s4571_s2 + $0x1f0] sm:$0xff]  ;;  %v3508_v2 = vld [vmem:[%s4571_s2 + $0x1e8] sm:$0xff] }
 0x26f   : > { %1216 = vmatpush.msra.mxu2 %v1130_v4 }
 0x271   : > { %1217 = vmatpush.msra.mxu2 %v1128_v3  ;;  %v3507_v3 = vld [vmem:[%s4571_s2 + $0x1e0] sm:$0xff] }
 0x2d3   : > { %v869_v29 = vpop.f32.mrf.mxu3 }
 0x2db   : > { %v872_v30 = vpop.f32.mrf.mxu3 }
 0x2dc   : > { %v875_v31 = vpack.c.bf16 %v872_v30, %v869_v29  ;;  %v3468_v30 = vld [vmem:[%s4573_s4 + $0x18] sm:$0xff] }
 0x2dd   : > { %1252 = vmatpush.bf16.msrb.mxu3 %v3468_v30  ;;  %v3500_v30 = vld [vmem:[%s4571_s2 + $0xe8] sm:$0xff] }
 0x2de   : > { %2947 = vmatmul.msk.bf16.vlgmr.msra.gmra.mxu0 %vm778_vm0, %v875_v31  ;;  %v3467_v31 = vld [vmem:[%s4573_s4 + $0x10] sm:$0xff] }
 0x2e1   : > { %1253 = vmatpush.bf16.msrb.mxu3 %v3467_v31  ;;  %v3499_v31 = vld [vmem:[%s4571_s2 + $0xe0] sm:$0xff] }
 0x2e3   : > { %v959_v33 = vpop.f32.mrf.mxu3  ;;  %v1368_v41 = vpop.f32.mrf.mxu1 }
 0x2e4   : > { %v960_v35 = vadd.f32 %v3601_v32, %v959_v33 }
 0x2e5   : > { %1527 = vmatpush.bf16.msra.mxu3 %v3492_v47 }
 0x2e6   : > { %2920 = vmatmul.msk.f32.vlgmr.msrb.gmra.mxu2 %vm778_vm0, %v960_v35 }
 0x2e7   : > { %1443 = vmatpush.bf16.msrb.mxu2 %v3484_v5 }
 0x2eb   : > { %v961_v36 = vpop.f32.mrf.mxu3  ;;  %1444 = vmatpush.bf16.msrb.mxu2 %v3483_v6  ;;  %v1370_v44 = vpop.f32.mrf.mxu1 }
 0x2ec   : > { %v962_v37 = vadd.f32 %v3601_v32, %v961_v36 }
 0x2ee   : > { %2921 = vmatmul.msk.f32.gmra.mxu2 %vm778_vm0, %v962_v37  ;;  %v3603_v37 = vld [vmem:[%s4572_s3 + $0x6] ss:$0 sm:$0xff] }
 0x2ef   : > { %1445 = vmatpush.bf16.msrb.mxu2 %v3482_v7  ;;  %v3506_v7 = vld [vmem:[%s4571_s2 + $0x1d8] sm:$0xff] }
 0x2f3   : > { %1446 = vmatpush.bf16.msrb.mxu2 %v3481_v8  ;;  %v3502_v8 = vld [vmem:[%s4571_s2 + $0xf8] sm:$0xff] }
 0x2f7   : > { %1447 = vmatpush.bf16.msrb.mxu2 %v3480_v10  ;;  %v3505_v10 = vld [vmem:[%s4571_s2 + $0x1d0] sm:$0xff] }
 0x2fb   : > { %1448 = vmatpush.bf16.msrb.mxu2 %v3479_v12 }
 0x2ff   : > { %1449 = vmatpush.bf16.msrb.mxu2 %v3478_v14 }
 0x303   : > { %1450 = vmatpush.bf16.msrb.mxu2 %v3477_v19 }
 0x369   : > { %v1161_v43 = vpop.f32.mrf.mxu2 }
 0x36a   : > { %v1167_v45 = vmul.f32 0.17677669, %v1161_v43  ;;  %v1369_v43 = vadd.f32 %v3604_v40, %v1368_v41 }
 0x36c   : > { %v1169_v46 = vadd.f32 %v3957_v34, %v1167_v45  ;;  %v1371_v45 = vadd.f32 %v3604_v40, %v1370_v44  ;;  %v3606_v44 = vld [vmem:[%s4572_s3 + $0x7] ss:$0 sm:$0xff] }
 0x36e   : > { %v1171_v48 = vsel %vm821_vm1, %v1169_v46, -inf }
 0x36f   : > { %1172 = vmax.xlane.f32.xlu2 %v1171_v48  ;;  %v3491_v48 = vld [vmem:[%s4571_s2 + $0x2b0] sm:$0xff] }
 0x370   : > { %1528 = vmatpush.bf16.msra.mxu3 %v3491_v48  ;;  %v3493_v48 = vld [vmem:[%s4573_s4 + $0x20] sm:$0xff] }
 0x371   : > { %v1164_v49 = vpop.f32.mrf.mxu2 }
 0x372   : > { %v1168_v51 = vmul.f32 0.17677669, %v1164_v49  ;;  %v3490_v49 = vld [vmem:[%s4571_s2 + $0x2a8] sm:$0xff] }
 0x374   : > { %v1170_v52 = vadd.f32 %v3957_v34, %v1168_v51  ;;  %1529 = vmatpush.bf16.msra.mxu3 %v3490_v49  ;;  %v3489_v51 = vld [vmem:[%s4571_s2 + $0x2a0] sm:$0xff] }
 0x376   : > { %v1174_v53 = vsel %vm821_vm1, %v1170_v52, -inf }
 0x377   : > { %1175 = vmax.xlane.f32.xlu2 %v1174_v53 }
 0x378   : > { %1530 = vmatpush.bf16.msra.mxu3 %v3489_v51 }
 0x3e2   : > { %v1173_v54 = vpop.xlane.xlu2 %1172 }
 0x3e3   : > { %v1177_v55 = vsub.f32 %v1169_v46, %v1173_v54  ;;  %v4163_v46 = vpop.f32.mrf.mxu0  ;;  %v3487_v54 = vld [vmem:[%s4571_s2 + $0x290] sm:$0xff] }
 0x3e5   : > { %v1179_v56 = vmul.f32 1.442695, %v1177_v55 }
 0x3e7   : > { %3623 = vpow2.f32 %v1179_v56 }
 0x3ea   : > { %v1176_v57 = vpop.xlane.xlu2 %1175 }
 0x3eb   : > { %v1178_v58 = vsub.f32 %v1170_v52, %v1176_v57  ;;  %v4174_v50 = vpop.f32.mrf.mxu0  ;;  %v3488_v52 = vld [vmem:[%s4571_s2 + $0x298] sm:$0xff]  ;;  %v3486_v57 = vld [vmem:[%s4571_s2 + $0x288] sm:$0xff] }
 0x3ec   : > { %1531 = vmatpush.bf16.msra.mxu3 %v3488_v52 }
 0x3ed   : > { %v3624_v59 = vpop.eup %3623  ;;  %v1181_v60 = vmul.f32 1.442695, %v1178_v58 }
 0x3ee   : > { %v1183_v61 = vsel %vm821_vm1, %v3624_v59, 0.0 }
 0x3ef   : > { %3625 = vpow2.f32 %v1181_v60  ;;  %1184 = vadd.xlane.f32.xlu0 %v1183_v61  ;;  %v3485_v60 = vld [vmem:[%s4571_s2 + $0x280] sm:$0xff] }
 0x3f0   : > { %1532 = vmatpush.bf16.msra.mxu3 %v3487_v54 }
 0x3f4   : > { %1533 = vmatpush.bf16.msra.mxu3 %v3486_v57 }
 0x3f5   : > { %v3626_v62 = vpop.eup %3625 }
 0x3f6   : > { %v1186_v0 = vsel %vm821_vm1, %v3626_v62, 0.0 }
 0x3f7   : > { %1187 = vadd.xlane.f32.xlu1 %v1186_v0  ;;  %v3510_v0 = vld [vmem:[%s4571_s2 + $0x1f8] sm:$0xff] }
 0x3f8   : > { %1534 = vmatpush.bf16.msra.mxu3 %v3485_v60  ;;  %v3518_v60 = vld [vmem:[%s4571_s2 + $0x2f8] sm:$0xff] }
 0x462   : > { %v1185_v23 = vpop.xlane.xlu0 %1184 }
 0x463   : > { %3627 = vrcp.f32 %v1185_v23 }
 0x469   : > { %v3628_v25 = vpop.eup %3627 }
 0x46a   : > { %v1191_v26 = vmul.f32 %v3628_v25, %v3624_v59  ;;  %v1188_v27 = vpop.xlane.xlu1 %1187  ;;  %v3605_v25 = vld [vmem:[%s4572_s3 + $0xa] ss:$0 sm:$0xff] }
 0x46b   : > { %3629 = vrcp.f32 %v1188_v27 }
 0x46c   : > { %2922 = vst.msk [vmem:[%s4030_s27 + $0x10] sm:$0xff] %vm821_vm1, %v1191_v26  ;;  %2924 = vmatmul.msk.f32.vlgmr.msra.gmra.mxu2 %vm821_vm1, %v1191_v26 }
 0x46d   : > { %1741 = vmatpush.bf16.msra.mxu2 %v3502_v8 }
 0x471   : > { %v3630_v28 = vpop.eup %3629 }
 0x472   : > { %v1192_v29 = vmul.f32 %v3630_v28, %v3626_v62 }
 0x474   : > { %2923 = vst.msk [vmem:[%s4030_s27 + $0x18] sm:$0xff] %vm821_vm1, %v1192_v29  ;;  %2925 = vmatmul.msk.f32.gmra.mxu2 %vm821_vm1, %v1192_v29  ;;  %v3501_v29 = vld [vmem:[%s4571_s2 + $0xf0] sm:$0xff] }
 0x475   : > { %1742 = vmatpush.bf16.msra.mxu2 %v3501_v29 }
 0x479   : > { %1743 = vmatpush.bf16.msra.mxu2 %v3500_v30 }
 0x47c   : > { %1451 = vmatmul.bf16.vlgmr.msrb.gmra.mxu2 %v3923_v18 }
 0x47d   : > { %1744 = vmatpush.bf16.msra.mxu2 %v3499_v31 }
 0x4ef   : > { %v1219_v32 = vpop.f32.mrf.mxu2 }
 0x4f7   : > { %v1222_v33 = vpop.f32.mrf.mxu2 }
 0x4f8   : > { %v1225_v35 = vpack.c.bf16 %v1222_v33, %v1219_v32  ;;  %v3498_v32 = vld [vmem:[%s4571_s2 + $0xd8] sm:$0xff]  ;;  %v3497_v33 = vld [vmem:[%s4571_s2 + $0xd0] sm:$0xff] }
 0x4f9   : > { %1745 = vmatpush.bf16.msra.mxu2 %v3498_v32 }
 0x4fa   : > { %2938 = vmatmul.msk.bf16.vlgmr.msrb.gmra.mxu3 %vm778_vm0, %v1225_v35  ;;  %v3496_v35 = vld [vmem:[%s4571_s2 + $0xc8] sm:$0xff] }
 0x4fb   : > { %1825 = vmatpush.bf16.msrb.mxu3 %v3510_v0 }
 0x4fd   : > { %1746 = vmatpush.bf16.msra.mxu2 %v3497_v33 }
 0x4ff   : > { %v1452_v36 = vpop.f32.mrf.mxu2  ;;  %1826 = vmatpush.bf16.msrb.mxu3 %v3509_v1  ;;  %v3516_v1 = vld [vmem:[%s4571_s2 + $0x2e8] sm:$0xff] }
 0x500   : > { %v1453_v42 = vadd.f32 %v3603_v37, %v1452_v36  ;;  %v3495_v36 = vld [vmem:[%s4571_s2 + $0xc0] sm:$0xff] }
 0x501   : > { %1747 = vmatpush.bf16.msra.mxu2 %v3496_v35 }
 0x503   : > { %1827 = vmatpush.bf16.msrb.mxu3 %v3508_v2 }
 0x505   : > { %1748 = vmatpush.bf16.msra.mxu2 %v3495_v36 }
 0x507   : > { %v1454_v38 = vpop.f32.mrf.mxu2  ;;  %1828 = vmatpush.bf16.msrb.mxu3 %v3507_v3 }
 0x508   : > { %v1455_v39 = vadd.f32 %v3603_v37, %v1454_v38  ;;  %1749 = vmatmul.bf16.vlgmr.msra.gmra.mxu2 %v3923_v18 }
 0x50a   : > { %3095 = vmatpush.xpose.msk.msrb.mxu0 %vm778_vm0, %v1455_v39  ;;  %1535 = vmatmul.bf16.vlgmr.msra.gmra.mxu3 %v3923_v18 }
 0x50b   : > { %1829 = vmatpush.bf16.msrb.mxu3 %v3506_v7  ;;  %v3513_v7 = vld [vmem:[%s4571_s2 + $0x2d0] sm:$0xff] }
 0x50e   : > { %3096 = vmatpush.xpose.msk.msrb.mxu0 %vm778_vm0, %v1453_v42 }
 0x50f   : > { %1830 = vmatpush.bf16.msrb.mxu3 %v3505_v10 }
 0x511   : > { %3097 = vmatmul.msk.f32.vlgmr.msrb.gmra.mxu0 %vm778_vm0, %v1369_v43 }
 0x513   : > { %1831 = vmatpush.bf16.msrb.mxu3 %v3504_v17 }
 0x517   : > { %1832 = vmatpush.bf16.msrb.mxu3 %v3503_v20 }
 0x519   : > { %3098 = vmatmul.msk.f32.gmra.mxu0 %vm778_vm0, %v1371_v45  ;;  %v3494_v45 = vld [vmem:[%s4573_s4 + $0x28] sm:$0xff] }
 0x51a   : > { %1833 = vmatmul.bf16.vlgmr.msrb.gmra.mxu3 %v3923_v18  ;;  %1661 = vmatpush.bf16.msrb.mxu1 %v3494_v45 }
 0x51e   : > { %1662 = vmatpush.bf16.msrb.mxu1 %v3493_v48 }
 0x57d   : > { %v4214_v9 = vpop.f32.mrf.mxu3 }
 0x585   : > { %v4226_v21 = vpop.f32.mrf.mxu3 }
 0x586   : > { %v1287_v2 = vadd.f32 %v4174_v50, %v4226_v21 }
 0x58d   : > { %v1536_v24 = vpop.f32.mrf.mxu3 }
 0x58e   : > { %v1570_v53 = vpop.f32.mrf.mxu0  ;;  %v1537_v27 = vadd.f32 %v3605_v25, %v1536_v24 }
 0x58f   : > { %v1576_v55 = vmul.f32 0.17677669, %v1570_v53 }
 0x591   : > { %v1578_v56 = vadd.f32 %v3957_v34, %v1576_v55  ;;  %v3607_v55 = vld [vmem:[%s4572_s3 + $0x3] ss:$0 sm:$0xff] }
 0x593   : > { %v1580_v58 = vsel %vm821_vm1, %v1578_v56, -inf }
 0x594   : > { %1581 = vmax.xlane.f32.xlu2 %v1580_v58 }
 0x595   : > { %v1538_v26 = vpop.f32.mrf.mxu3 }
 0x596   : > { %v1573_v59 = vpop.f32.mrf.mxu0  ;;  %v1539_v28 = vadd.f32 %v3605_v25, %v1538_v26 }
 0x597   : > { %v1577_v61 = vmul.f32 0.17677669, %v1573_v59 }
 0x598   : > { %1625 = vmatpush.msra.mxu0 %v1539_v28 }
 0x599   : > { %v1579_v62 = vadd.f32 %v3957_v34, %v1577_v61  ;;  %v1285_v61 = vadd.f32 %v4163_v46, %v4214_v9  ;;  %v3515_v46 = vld [vmem:[%s4571_s2 + $0x2e0] sm:$0xff]  ;;  %v3512_v9 = vld [vmem:[%s4571_s2 + $0x2c8] sm:$0xff] }
 0x59a   : > { %1626 = vmatpush.msra.mxu0 %v1537_v27 }
 0x59b   : > { %v1583_v63 = vsel %vm821_vm1, %v1579_v62, -inf }
 0x59c   : > { %1584 = vmax.xlane.f32.xlu0 %v1583_v63  ;;  %1909 = vmatpush.bf16.msrb.mxu0 %v3518_v60  ;;  %v3517_v63 = vld [vmem:[%s4571_s2 + $0x2f0] sm:$0xff] }
 0x59d   : > { %v1834_v43 = vpop.f32.mrf.mxu3 }
 0x59e   : > { %v1835_v51 = vadd.f32 %v3606_v44, %v1834_v43 }
 0x5a0   : > { %1910 = vmatpush.bf16.msrb.mxu0 %v3517_v63 }
 0x5a4   : > { %1911 = vmatpush.bf16.msrb.mxu0 %v3516_v1 }
 0x5a5   : > { %v1836_v47 = vpop.f32.mrf.mxu3 }
 0x5a6   : > { %v1837_v49 = vadd.f32 %v3606_v44, %v1836_v47  ;;  %v3609_v44 = vld [vmem:[%s4574_s5] ss:$0 sm:$0xff] }
 0x5a8   : > { %3263 = vmatpush.xpose.msk.msra.mxu1 %vm778_vm0, %v1837_v49  ;;  %1912 = vmatpush.bf16.msrb.mxu0 %v3515_v46  ;;  %v3342_v46 = vld [vmem:[%s4577_s8 + $0x70] sm:$0xf] }
 0x5ac   : > { %3264 = vmatpush.xpose.msk.msra.mxu1 %vm778_vm0, %v1835_v51 }
 0x607   : > { %v1582_v4 = vpop.xlane.xlu2 %1581 }
 0x608   : > { %v1586_v5 = vsub.f32 %v1578_v56, %v1582_v4  ;;  %v1750_v56 = vpop.f32.mrf.mxu2 }
 0x609   : > { %v1751_v57 = vadd.f32 %v3607_v55, %v1750_v56 }
 0x60a   : > { %v1588_v6 = vmul.f32 1.442695, %v1586_v5  ;;  %v3514_v5 = vld [vmem:[%s4571_s2 + $0x2d8] sm:$0xff] }
 0x60b   : > { %1913 = vmatpush.bf16.msrb.mxu0 %v3514_v5  ;;  %v3535_v5 = vld [vmem:[%s4577_s8 + $0x74] sm:$0xf] }
 0x60c   : > { %3631 = vpow2.f32 %v1588_v6 }
 0x60f   : > { %v1585_v11 = vpop.xlane.xlu0 %1584  ;;  %1914 = vmatpush.bf16.msrb.mxu0 %v3513_v7  ;;  %v3344_v7 = vld [vmem:[%s4577_s8 + $0x78] sm:$0xf0] }
 0x610   : > { %v1587_v12 = vsub.f32 %v1579_v62, %v1585_v11  ;;  %v1752_v58 = vpop.f32.mrf.mxu2 }
 0x611   : > { %v1753_v59 = vadd.f32 %v3607_v55, %v1752_v58  ;;  %v3729_v55 = vmov 128.0  }
 0x612   : > { %v3632_v13 = vpop.eup %3631  ;;  %v1590_v14 = vmul.f32 1.442695, %v1587_v12  ;;  %v3511_v12 = vld [vmem:[%s4571_s2 + $0x2c0] sm:$0xff] }
 0x613   : > { %v1592_v19 = vsel %vm821_vm1, %v3632_v13, 0.0  ;;  %1915 = vmatpush.bf16.msrb.mxu0 %v3512_v9  ;;  %v3534_v9 = vld [vmem:[%s4577_s8 + $0x64] sm:$0xf0] }
 0x614   : > { %3633 = vpow2.f32 %v1590_v14  ;;  %1593 = vadd.xlane.f32.xlu1 %v1592_v19 }
 0x617   : > { %1916 = vmatpush.bf16.msrb.mxu0 %v3511_v12  ;;  %v3336_v12 = vld [vmem:[%s4577_s8 + $0x68] sm:$0xf0] }
 0x61a   : > { %v3634_v22 = vpop.eup %3633 }
 0x61b   : > { %v1595_v23 = vsel %vm821_vm1, %v3634_v22, 0.0 }
 0x61c   : > { %1596 = vadd.xlane.f32.xlu2 %v1595_v23 }
 0x687   : > { %v1594_v37 = vpop.xlane.xlu1 %1593 }
 0x688   : > { %3635 = vrcp.f32 %v1594_v37 }
 0x68e   : > { %v3636_v38 = vpop.eup %3635 }
 0x68f   : > { %v1600_v39 = vmul.f32 %v3636_v38, %v3632_v13  ;;  %v1597_v40 = vpop.xlane.xlu2 %1596 }
 0x690   : > { %3637 = vrcp.f32 %v1597_v40  ;;  %v3519_v40 = vld [vmem:[%s4573_s4 + $0x30] sm:$0xff] }
 0x691   : > { %3099 = vst.msk [vmem:[%s4030_s27 + $0x20] sm:$0xff] %vm821_vm1, %v1600_v39  ;;  %3101 = vmatmul.msk.f32.vlgmr.msra.gmra.mxu0 %vm821_vm1, %v1600_v39  ;;  %v3520_v39 = vld [vmem:[%s4573_s4 + $0x38] sm:$0xff] }
 0x692   : > { %2043 = vmatpush.bf16.msrb.mxu2 %v3520_v39 }
 0x696   : > { %v3638_v41 = vpop.eup %3637  ;;  %2044 = vmatpush.bf16.msrb.mxu2 %v3519_v40  ;;  %v3294_v40 = vld [vmem:[%s4577_s8 + $0x10] sm:$0xf] }
 0x697   : > { %v1601_v42 = vmul.f32 %v3638_v41, %v3634_v22 }
 0x699   : > { %3100 = vst.msk [vmem:[%s4030_s27 + $0x28] sm:$0xff] %vm821_vm1, %v1601_v42  ;;  %3102 = vmatmul.msk.f32.gmra.mxu0 %vm821_vm1, %v1601_v42 }
 0x6a1   : > { %1917 = vmatmul.bf16.vlgmr.msrb.gmra.mxu0 %v3923_v18  ;;  %v3608_v18 = vld [vmem:[%s4572_s3 + $0xb] ss:$0 sm:$0xff] }
 0x70e   : > { %v1628_v52 = vpop.f32.mrf.mxu0 }
 0x716   : > { %v1631_v53 = vpop.f32.mrf.mxu0 }
 0x717   : > { %v1634_v54 = vpack.c.bf16 %v1631_v53, %v1628_v52 }
 0x719   : > { %3115 = vmatmul.msk.bf16.vlgmr.msrb.gmra.mxu1 %vm778_vm0, %v1634_v54 }
 0x729   : > { %3265 = vmatmul.msk.f32.vlgmr.msra.gmra.mxu1 %vm778_vm0, %v1751_v57 }
 0x731   : > { %3266 = vmatmul.msk.f32.gmra.mxu1 %vm778_vm0, %v1753_v59 }
 0x796   : > { %v1664_v62 = vpop.f32.mrf.mxu1 }
 0x797   : > { %v4286_v0 = vadd.f32 %v1664_v62, %v1285_v61 }
 0x79e   : > { %v1666_v3 = vpop.f32.mrf.mxu1 }
 0x79f   : > { %v4296_v4 = vadd.f32 %v1666_v3, %v1287_v2 }
 0x7a6   : > { %v1952_v6 = vpop.f32.mrf.mxu1 }
 0x7a7   : > { %v1958_v50 = vmul.f32 0.17677669, %v1952_v6 }
 0x7a9   : > { %v1960_v8 = vadd.f32 %v3957_v34, %v1958_v50  ;;  %v3347_v50 = vor.u32 %v3535_v5, %v3344_v7 }
 0x7ab   : > { %v1962_v10 = vsel %vm821_vm1, %v1960_v8, -inf  ;;  %2237 = vmatpush.bf16.msra.mxu0 %v3347_v50 }
 0x7ac   : > { %1963 = vmax.xlane.f32.xlu0 %v1962_v10  ;;  %v3533_v10 = vld [vmem:[%s4577_s8 + $0x64] sm:$0xf] }
 0x7ae   : > { %v1955_v11 = vpop.f32.mrf.mxu1 }
 0x7af   : > { %v1959_v13 = vmul.f32 0.17677669, %v1955_v11 }
 0x7b1   : > { %v1961_v14 = vadd.f32 %v3957_v34, %v1959_v13  ;;  %v1918_v34 = vpop.f32.mrf.mxu0  ;;  %v3339_v13 = vor.u32 %v3533_v10, %v3336_v12 }
 0x7b2   : > { %v1919_v30 = vadd.f32 %v3608_v18, %v1918_v34 }
 0x7b3   : > { %v1965_v17 = vsel %vm821_vm1, %v1961_v14, -inf  ;;  %2238 = vmatpush.bf16.msra.mxu0 %v3339_v13  ;;  %v3611_v13 = vld [vmem:[%s4576_s7] ss:$0 sm:$0xff] }
 0x7b4   : > { %1966 = vmax.xlane.f32.xlu1 %v1965_v17  ;;  %v3532_v17 = vld [vmem:[%s4577_s8 + $0x54] sm:$0xf0] }
 0x7b9   : > { %v1920_v29 = vpop.f32.mrf.mxu0 }
 0x7ba   : > { %v1921_v31 = vadd.f32 %v3608_v18, %v1920_v29  ;;  %v3528_v18 = vld [vmem:[%s4577_s8 + $0x34] sm:$0xf0]  ;;  %v3527_v29 = vld [vmem:[%s4577_s8 + $0x34] sm:$0xf] }
 0x7bc   : > { %2007 = vmatpush.msrb.mxu1 %v1921_v31  ;;  %v3312_v31 = vld [vmem:[%s4577_s8 + $0x38] sm:$0xf0] }
 0x7be   : > { %2008 = vmatpush.msrb.mxu1 %v1919_v30 }
 0x81f   : > { %v1964_v19 = vpop.xlane.xlu0 %1963 }
 0x820   : > { %v1968_v20 = vsub.f32 %v1960_v8, %v1964_v19  ;;  %v3334_v8 = vld [vmem:[%s4577_s8 + $0x60] sm:$0xf]  ;;  %v3531_v19 = vld [vmem:[%s4577_s8 + $0x54] sm:$0xf] }
 0x821   : > { %v3335_v11 = vor.u32 %v3534_v9, %v3334_v8  ;;  %v3610_v8 = vld [vmem:[%s4575_s6] ss:$0 sm:$0xff] }
 0x822   : > { %v1970_v21 = vmul.f32 1.442695, %v1968_v20 }
 0x824   : > { %3639 = vpow2.f32 %v1970_v21  ;;  %v3328_v21 = vld [vmem:[%s4577_s8 + $0x58] sm:$0xf0] }
 0x827   : > { %v1967_v22 = vpop.xlane.xlu1 %1966 }
 0x828   : > { %v1969_v23 = vsub.f32 %v1961_v14, %v1967_v22  ;;  %v3326_v14 = vld [vmem:[%s4577_s8 + $0x50] sm:$0xf]  ;;  %v3331_v22 = vor.u32 %v3531_v19, %v3328_v21  ;;  %v3544_v21 = vld [vmem:[%s4579_s10 + $0x38] sm:$0xff] }
 0x829   : > { %v3327_v20 = vor.u32 %v3532_v17, %v3326_v14  ;;  %2421 = vmatpush.bf16.msra.mxu1 %v3544_v21 }
 0x82a   : > { %v3640_v24 = vpop.eup %3639  ;;  %v1972_v25 = vmul.f32 1.442695, %v1969_v23  ;;  %2239 = vmatpush.bf16.msra.mxu0 %v3331_v22  ;;  %v3318_v23 = vld [vmem:[%s4577_s8 + $0x40] sm:$0xf]  ;;  %v3550_v22 = vld [vmem:[%s4579_s10 + $0x68] sm:$0xff] }
 0x82b   : > { %v1974_v26 = vsel %vm821_vm1, %v3640_v24, 0.0 }
 0x82c   : > { %3641 = vpow2.f32 %v1972_v25  ;;  %1975 = vadd.xlane.f32.xlu2 %v1974_v26  ;;  %v3529_v25 = vld [vmem:[%s4577_s8 + $0x44] sm:$0xf] }
 0x832   : > { %v3642_v27 = vpop.eup %3641 }
 0x833   : > { %v1977_v28 = vsel %vm821_vm1, %v3642_v27, 0.0 }
 0x834   : > { %1978 = vadd.xlane.f32.xlu0 %v1977_v28  ;;  %v3310_v28 = vld [vmem:[%s4577_s8 + $0x30] sm:$0xf] }
 0x835   : > { %v3311_v30 = vor.u32 %v3528_v18, %v3310_v28  ;;  %v3540_v28 = vld [vmem:[%s4579_s10 + $0x18] sm:$0xff]  ;;  %v3546_v18 = vld [vmem:[%s4579_s10 + $0x48] sm:$0xff] }
 0x89f   : > { %v1976_v32 = vpop.xlane.xlu2 %1975 }
 0x8a0   : > { %3643 = vrcp.f32 %v1976_v32  ;;  %v3315_v32 = vor.u32 %v3527_v29, %v3312_v31  ;;  %v3539_v29 = vld [vmem:[%s4579_s10 + $0x10] sm:$0xff]  ;;  %v3545_v31 = vld [vmem:[%s4579_s10 + $0x40] sm:$0xff] }
 0x8a6   : > { %v3644_v33 = vpop.eup %3643 }
 0x8a7   : > { %v1982_v35 = vmul.f32 %v3644_v33, %v3640_v24  ;;  %v1979_v36 = vpop.xlane.xlu0 %1978  ;;  %v3530_v24 = vld [vmem:[%s4577_s8 + $0x44] sm:$0xf0]  ;;  %v3302_v33 = vld [vmem:[%s4577_s8 + $0x20] sm:$0xf] }
 0x8a8   : > { %3645 = vrcp.f32 %v1979_v36  ;;  %v3319_v26 = vor.u32 %v3530_v24, %v3318_v23  ;;  %v3525_v36 = vld [vmem:[%s4577_s8 + $0x24] sm:$0xf]  ;;  %v3543_v23 = vld [vmem:[%s4579_s10 + $0x30] sm:$0xff] }
 0x8a9   : > { %3267 = vst.msk [vmem:[%s4030_s27 + $0x30] sm:$0xff] %vm821_vm1, %v1982_v35  ;;  %3269 = vmatmul.msk.f32.vlgmr.msrb.gmra.mxu1 %vm821_vm1, %v1982_v35  ;;  %3647 = vrcp.f32 %v3729_v55  ;;  %v3526_v35 = vld [vmem:[%s4577_s8 + $0x24] sm:$0xf0]  ;;  %v3549_v24 = vld [vmem:[%s4579_s10 + $0x60] sm:$0xff] }
 0x8aa   : > { %2422 = vmatpush.bf16.msra.mxu1 %v3543_v23  ;;  %v3612_v23 = vld [vmem:[%s4580_s11] ss:$0 sm:$0xff] }
 0x8ae   : > { %v3646_v37 = vpop.eup %3645 }
 0x8af   : > { %v1983_v38 = vmul.f32 %v3646_v37, %v3642_v27  ;;  %v3648_v56 = vpop.eup %3647  ;;  %v3320_v27 = vld [vmem:[%s4577_s8 + $0x48] sm:$0xf0]  ;;  %v3303_v37 = vor.u32 %v3526_v35, %v3302_v33 }
 0x8b0   : > { %v2068_v57 = vmul.f32 128.0, %v3648_v56  ;;  %vm2072_vm2 = vweird.f32 %v3648_v56  ;;  %v3323_v34 = vor.u32 %v3529_v25, %v3320_v27  ;;  %v3542_v25 = vld [vmem:[%s4579_s10 + $0x28] sm:$0xff]  ;;  %v3541_v27 = vld [vmem:[%s4579_s10 + $0x20] sm:$0xff] }
 0x8b1   : > { %3268 = vst.msk [vmem:[%s4030_s27 + $0x38] sm:$0xff] %vm821_vm1, %v1983_v38  ;;  %3270 = vmatmul.msk.f32.gmra.mxu1 %vm821_vm1, %v1983_v38  ;;  %v3304_v38 = vld [vmem:[%s4577_s8 + $0x28] sm:$0xf0] }
 0x8b2   : > { %v2069_v58 = vsub.f32 1.0, %v2068_v57  ;;  %2240 = vmatpush.bf16.msra.mxu0 %v3323_v34  ;;  %v3307_v39 = vor.u32 %v3525_v36, %v3304_v38  ;;  %2423 = vmatpush.bf16.msra.mxu1 %v3542_v25  ;;  %v3547_v34 = vld [vmem:[%s4579_s10 + $0x50] sm:$0xff]  ;;  %v3538_v33 = vld [vmem:[%s4579_s10 + $0x8] sm:$0xff] }
 0x8b4   : > { %v2070_v59 = vmul.f32 %v3648_v56, %v2069_v58 }
 0x8b6   : > { %v2071_v60 = vadd.f32 %v3648_v56, %v2070_v59  ;;  %2241 = vmatpush.bf16.msra.mxu0 %v3315_v32  ;;  %2424 = vmatpush.bf16.msra.mxu1 %v3541_v27 }
 0x8b8   : > { %v4340_v61 = vsel %vm2072_vm2, %v3648_v56, %v2071_v60 }
 0x8ba   : > { %2242 = vmatpush.bf16.msra.mxu0 %v3307_v39  ;;  %2425 = vmatpush.bf16.msra.mxu1 %v3540_v28 }
 0x8be   : > { %2426 = vmatpush.bf16.msra.mxu1 %v3539_v29 }
 0x8c2   : > { %2427 = vmatpush.bf16.msra.mxu1 %v3538_v33 }
 0x926   : > { %v2010_v41 = vpop.f32.mrf.mxu1 }
 0x92e   : > { %v2013_v42 = vpop.f32.mrf.mxu1 }
 0x92f   : > { %v2016_v43 = vpack.c.bf16 %v2013_v42, %v2010_v41  ;;  %v3524_v41 = vld [vmem:[%s4577_s8 + $0x14] sm:$0xf0]  ;;  %v3523_v42 = vld [vmem:[%s4577_s8 + $0x14] sm:$0xf] }
 0x931   : > { %3283 = vmatmul.msk.bf16.vlgmr.msrb.gmra.mxu2 %vm778_vm0, %v2016_v43  ;;  %v3295_v43 = vor.u32 %v3524_v41, %v3294_v40 }
 0x9b4   : > { %v2046_v45 = vpop.f32.mrf.mxu2 }
 0x9b5   : > { %v2051_v47 = vadd.f32 %v2046_v45, %v4286_v0 }
 0x9b7   : > { %v2057_v48 = vadd.f32 %v3609_v44, %v2051_v47  ;;  %v3286_v47 = vld [vmem:[%s4577_s8] sm:$0xf] }
 0x9b9   : > { %v2059_v49 = vadd.f32 %v2057_v48, %v3914_v15  ;;  %v3522_v48 = vld [vmem:[%s4577_s8 + $0x4] sm:$0xf0] }
 0x9bb   : > { %2063 = vadd.xlane.f32.xlu1 %v2059_v49 }
 0x9bc   : > { %v2048_v51 = vpop.f32.mrf.mxu2 }
 0x9bd   : > { %v2052_v52 = vadd.f32 %v2048_v51, %v4296_v4  ;;  %v3536_v4 = vld [vmem:[%s4577_s8 + $0x74] sm:$0xf0] }
 0x9be   : > { %v3343_v6 = vor.u32 %v3536_v4, %v3342_v46 }
 0x9bf   : > { %v2058_v53 = vadd.f32 %v3609_v44, %v2052_v52  ;;  %v3296_v44 = vld [vmem:[%s4577_s8 + $0x18] sm:$0xf0]  ;;  %v3287_v52 = vor.u32 %v3522_v48, %v3286_v47 }
 0x9c0   : > { %2223 = vmatpush.bf16.msra.mxu3 %v3343_v6  ;;  %v3299_v45 = vor.u32 %v3523_v42, %v3296_v44 }
 0x9c1   : > { %v2060_v54 = vadd.f32 %v2058_v53, %v3916_v16  ;;  %v3288_v53 = vld [vmem:[%s4577_s8 + $0x8] sm:$0xf0] }
 0x9c2   : > { %2243 = vmatpush.bf16.msra.mxu0 %v3299_v45 }
 0x9c3   : > { %2065 = vadd.xlane.f32.xlu2 %v2060_v54 }
 0x9c4   : > { %2224 = vmatpush.bf16.msra.mxu3 %v3335_v11 }
 0x9c8   : > { %2225 = vmatpush.bf16.msra.mxu3 %v3327_v20  ;;  %v3552_v20 = vld [vmem:[%s4579_s10 + $0x78] sm:$0xff] }
 0x9c9   : > { %2435 = vmatpush.bf16.msra.mxu2 %v3552_v20 }
 0x9cc   : > { %2226 = vmatpush.bf16.msra.mxu3 %v3319_v26  ;;  %v3548_v26 = vld [vmem:[%s4579_s10 + $0x58] sm:$0xff] }
 0x9d0   : > { %2227 = vmatpush.bf16.msra.mxu3 %v3311_v30  ;;  %v2137_v30 = vld [vmem:[%s4578_s9] sm:$0x3] }
 0x9d1   : > { %v2140_v32 = vperm.slane %v2137_v30, 1  ;;  %v2139_v39 = vperm.slane %v2137_v30, 0 }
 0x9d4   : > { %2228 = vmatpush.bf16.msra.mxu3 %v3303_v37  ;;  %v3537_v37 = vld [vmem:[%s4579_s10] sm:$0xff] }
 0x9d5   : > { %2428 = vmatpush.bf16.msra.mxu1 %v3537_v37 }
 0x9d8   : > { %2229 = vmatpush.bf16.msra.mxu3 %v3295_v43 }
 0x9dc   : > { %2230 = vmatpush.bf16.msra.mxu3 %v3287_v52 }
 0xa2e   : > { %v2064_v62 = vpop.xlane.xlu1 %2063 }
 0xa2f   : > { %v2074_v15 = vmul.f32 %v4340_v61, %v2064_v62 }
 0xa31   : > { %v4343_v63 = vsub.f32 %v2059_v49, %v2074_v15  ;;  %v3521_v49 = vld [vmem:[%s4577_s8 + $0x4] sm:$0xf] }
 0xa32   : > { %v3291_v55 = vor.u32 %v3521_v49, %v3288_v53 }
 0xa33   : > { %v2078_v0 = vmul.f32 %v4343_v63, %v4343_v63 }
 0xa34   : > { %2244 = vmatpush.bf16.msra.mxu0 %v3291_v55 }
 0xa35   : > { %2080 = vadd.xlane.f32.xlu0 %v2078_v0 }
 0xa36   : > { %v2066_v16 = vpop.xlane.xlu2 %2065 }
 0xa37   : > { %v2075_v1 = vmul.f32 %v4340_v61, %v2066_v16 }
 0xa39   : > { %v4348_v2 = vsub.f32 %v2060_v54, %v2075_v1 }
 0xa3b   : > { %v2079_v3 = vmul.f32 %v4348_v2, %v4348_v2 }
 0xa3d   : > { %2082 = vadd.xlane.f32.xlu1 %v2079_v3 }
 0xaa8   : > { %v2081_v51 = vpop.xlane.xlu0 %2080 }
 0xaa9   : > { %v2084_v54 = vmul.f32 %v2081_v51, %v4340_v61 }
 0xaab   : > { %v2086_v56 = vadd.f32 1e-12, %v2084_v54 }
 0xaad   : > { %3649 = vrsqrt.f32 %v2086_v56  ;;  %vm2094_vm4 = vweird.f32 %v2086_v56 }
 0xab0   : > { %v2083_v57 = vpop.xlane.xlu1 %2082 }
 0xab1   : > { %v2085_v58 = vmul.f32 %v2083_v57, %v4340_v61 }
 0xab3   : > { %v3650_v59 = vpop.eup %3649  ;;  %v2087_v60 = vadd.f32 1e-12, %v2085_v58 }
 0xab4   : > { %v2089_v62 = vmul.f32 %v3650_v59, %v2086_v56  ;;  %vm2095_vm3 = vweird.f32 %v3650_v59 }
 0xab5   : > { %3651 = vrsqrt.f32 %v2087_v60  ;;  %vm2096_vm5 = vmor %vm2094_vm4, %vm2095_vm3  ;;  %vm2104_vm7 = vweird.f32 %v2087_v60 }
 0xab6   : > { %v2090_v15 = vmul.f32 %v3650_v59, %v2089_v62 }
 0xab8   : > { %v2091_v0 = vmul.f32 0.5, %v2090_v15 }
 0xaba   : > { %v2092_v16 = vsub.f32 1.5, %v2091_v0 }
 0xabb   : > { %v3652_v1 = vpop.eup %3651 }
 0xabc   : > { %v2093_v3 = vmul.f32 %v3650_v59, %v2092_v16  ;;  %v2099_v46 = vmul.f32 %v3652_v1, %v2087_v60  ;;  %vm2105_vm6 = vweird.f32 %v3652_v1 }
 0xabd   : > { %vm2106_vm8 = vmor %vm2104_vm7, %vm2105_vm6 }
 0xabe   : > { %v2100_v4 = vmul.f32 %v3652_v1, %v2099_v46  ;;  %v2097_v5 = vsel %vm2096_vm5, %v3650_v59, %v2093_v3 }
 0xabf   : > { %v2108_v50 = vmul.f32 %v2097_v5, %v4343_v63 }
 0xac0   : > { %v2101_v6 = vmul.f32 0.5, %v2100_v4 }
 0xac1   : > { %v2113_v12 = vmul.f32 %v3610_v8, %v2108_v50 }
 0xac2   : > { %v2102_v7 = vsub.f32 1.5, %v2101_v6 }
 0xac3   : > { %v4458_v17 = vadd.f32 %v3611_v13, %v2113_v12 }
 0xac4   : > { %v2103_v9 = vmul.f32 %v3652_v1, %v2102_v7 }
 0xac6   : > { %v2107_v10 = vsel %vm2106_vm8, %v3652_v1, %v2103_v9 }
 0xac7   : > { %v2109_v11 = vmul.f32 %v2107_v10, %v4348_v2  ;;  %v3551_v2 = vld [vmem:[%s4579_s10 + $0x70] sm:$0xff] }
 0xac8   : > { %2436 = vmatpush.bf16.msra.mxu2 %v3551_v2 }
 0xac9   : > { %v2114_v14 = vmul.f32 %v3610_v8, %v2109_v11 }
 0xacb   : > { %v4460_v19 = vadd.f32 %v3611_v13, %v2114_v14 }
 0xacc   : > { %2437 = vmatpush.bf16.msra.mxu2 %v3550_v22 }
 0xacd   : > { %v2120_v63 = vpack.c.bf16 %v4460_v19, %v4458_v17 }
 0xacf   : > { %2231 = vmatmul.bf16.vlgmr.msra.gmra.mxu3 %v2120_v63  ;;  %2245 = vmatmul.bf16.vlgmr.msra.gmra.mxu0 %v2120_v63 }
 0xad0   : > { %2438 = vmatpush.bf16.msra.mxu2 %v3549_v24 }
 0xad4   : > { %2439 = vmatpush.bf16.msra.mxu2 %v3548_v26 }
 0xad8   : > { %2440 = vmatpush.bf16.msra.mxu2 %v3547_v34 }
 0xadc   : > { %2441 = vmatpush.bf16.msra.mxu2 %v3546_v18 }
 0xae0   : > { %2442 = vmatpush.bf16.msra.mxu2 %v3545_v31 }
 0xb4c   : > { %v2246_v35 = vpop.f32.mrf.mxu0 }
 0xb4d   : > { %v2247_v36 = vadd.f32 %v2246_v35, %v2140_v32 }
 0xb4f   : > { %v2256_v38 = vmul.f32 0.044715, %v2247_v36  ;;  %v2252_v6 = vmul.f32 0.5, %v2247_v36 }
 0xb51   : > { %v2260_v40 = vmul.f32 %v2256_v38, %v2247_v36 }
 0xb52   : > { %v2232_v41 = vpop.f32.mrf.mxu3 }
 0xb53   : > { %v2264_v42 = vmul.f32 %v2260_v40, %v2247_v36  ;;  %v2233_v43 = vadd.f32 %v2232_v41, %v2139_v39 }
 0xb54   : > { %v2248_v44 = vpop.f32.mrf.mxu0 }
 0xb55   : > { %v2268_v45 = vadd.f32 %v2264_v42, %v2247_v36  ;;  %v2255_v47 = vmul.f32 0.044715, %v2233_v43  ;;  %v2249_v48 = vadd.f32 %v2248_v44, %v2140_v32  ;;  %v2251_v14 = vmul.f32 0.5, %v2233_v43 }
 0xb57   : > { %v2259_v49 = vmul.f32 %v2255_v47, %v2233_v43  ;;  %v2258_v51 = vmul.f32 0.044715, %v2249_v48  ;;  %v2272_v52 = vmul.f32 0.7978846, %v2268_v45  ;;  %v2254_v7 = vmul.f32 0.5, %v2249_v48 }
 0xb59   : > { %v2263_v53 = vmul.f32 %v2259_v49, %v2233_v43  ;;  %v2262_v54 = vmul.f32 %v2258_v51, %v2249_v48  ;;  %3653 = vtanh.f32 %v2272_v52 }
 0xb5a   : > { %v2234_v55 = vpop.f32.mrf.mxu3 }
 0xb5b   : > { %v2267_v56 = vadd.f32 %v2263_v53, %v2233_v43  ;;  %v2266_v57 = vmul.f32 %v2262_v54, %v2249_v48  ;;  %v2235_v58 = vadd.f32 %v2234_v55, %v2139_v39 }
 0xb5d   : > { %v2270_v59 = vadd.f32 %v2266_v57, %v2249_v48  ;;  %v2257_v60 = vmul.f32 0.044715, %v2235_v58  ;;  %v2271_v62 = vmul.f32 0.7978846, %v2267_v56  ;;  %v2253_v63 = vmul.f32 0.5, %v2235_v58 }
 0xb5f   : > { %v2274_v15 = vmul.f32 0.7978846, %v2270_v59  ;;  %v2261_v0 = vmul.f32 %v2257_v60, %v2235_v58  ;;  %v3654_v1 = vpop.eup %3653 }
 0xb60   : > { %v2280_v4 = vadd.f32 1.0, %v3654_v1 }
 0xb61   : > { %v2265_v16 = vmul.f32 %v2261_v0, %v2235_v58  ;;  %3655 = vtanh.f32 %v2274_v15 }
 0xb62   : > { %3657 = vtanh.f32 %v2271_v62  ;;  %v2284_v9 = vmul.f32 %v2280_v4, %v2252_v6 }
 0xb63   : > { %v2269_v3 = vadd.f32 %v2265_v16, %v2235_v58 }
 0xb65   : > { %v2273_v46 = vmul.f32 0.7978846, %v2269_v3 }
 0xb67   : > { %v3656_v5 = vpop.eup %3655  ;;  %3659 = vtanh.f32 %v2273_v46 }
 0xb68   : > { %v2282_v50 = vadd.f32 1.0, %v3656_v5  ;;  %v3658_v8 = vpop.eup %3657 }
 0xb69   : > { %v2279_v12 = vadd.f32 1.0, %v3658_v8 }
 0xb6a   : > { %v2286_v10 = vmul.f32 %v2282_v50, %v2254_v7 }
 0xb6b   : > { %v2283_v2 = vmul.f32 %v2279_v12, %v2251_v14 }
 0xb6c   : > { %v2288_v11 = vpack.c.bf16 %v2286_v10, %v2284_v9 }
 0xb6d   : > { %v3660_v13 = vpop.eup %3659 }
 0xb6e   : > { %2443 = vmatmul.bf16.vlgmr.msra.gmra.mxu2 %v2288_v11  ;;  %v2281_v20 = vadd.f32 1.0, %v3660_v13 }
 0xb70   : > { %v2285_v21 = vmul.f32 %v2281_v20, %v2253_v63 }
 0xb72   : > { %v2287_v22 = vpack.c.bf16 %v2285_v21, %v2283_v2 }
 0xb74   : > { %2429 = vmatmul.bf16.vlgmr.msra.gmra.mxu1 %v2287_v22 }
 0xbf1   : > { %v2430_v24 = vpop.f32.mrf.mxu1  ;;  %v2444_v25 = vpop.f32.mrf.mxu2 }
 0xbf2   : > { %v2431_v26 = vadd.f32 %v3612_v23, %v2430_v24 }
 0xbf4   : > { %v2445_v27 = vadd.f32 %v2444_v25, %v2431_v26 }
 0xbf6   : > { %v2449_v34 = vadd.f32 %v2445_v27, %v4458_v17 }
 0xbf8   : > { %2453 = vadd.xlane.f32.xlu2 %v2449_v34 }
 0xbf9   : > { %v2432_v28 = vpop.f32.mrf.mxu1  ;;  %v2446_v29 = vpop.f32.mrf.mxu2 }
 0xbfa   : > { %v2433_v18 = vadd.f32 %v3612_v23, %v2432_v28 }
 0xbfc   : > { %v2447_v30 = vadd.f32 %v2446_v29, %v2433_v18 }
 0xbfe   : > { %v2450_v31 = vadd.f32 %v2447_v30, %v4460_v19 }
 0xc00   : > { %2455 = vadd.xlane.f32.xlu0 %v2450_v31 }
 0xc6b   : > { %v2454_v32 = vpop.xlane.xlu2 %2453 }
 0xc6c   : > { %v2457_v33 = vmul.f32 %v2454_v32, %v4340_v61 }
 0xc6e   : > { %v2459_v35 = vsub.f32 %v2449_v34, %v2457_v33 }
 0xc70   : > { %v2461_v36 = vmul.f32 %v2459_v35, %v2459_v35 }
 0xc72   : > { %2463 = vadd.xlane.f32.xlu1 %v2461_v36 }
 0xc73   : > { %v2456_v37 = vpop.xlane.xlu0 %2455 }
 0xc74   : > { %v2458_v17 = vmul.f32 %v2456_v37, %v4340_v61 }
 0xc76   : > { %v2460_v38 = vsub.f32 %v2450_v31, %v2458_v17 }
 0xc78   : > { %v2462_v39 = vmul.f32 %v2460_v38, %v2460_v38 }
 0xc7a   : > { %2465 = vadd.xlane.f32.xlu2 %v2462_v39 }
 0xc7b   : > { %3692 = shalt.err (!%p3689_p4)
}
 0xc7c   : > { %s3730_s20 = smov 128   ;;  %s3731_s27 = smov 8   ;;  %v3613_v55 = vld [vmem:[%s4581_s12] ss:$0 sm:$0xff] }
 0xc7d   : > { %3554 = dma.vmem_to_hbm [thread:$0]  (%p3850_p5), %s2528_s21, 1024, %s2530_s26, %s2511_s24, %s3730_s20, %s3730_s20, %s3731_s27  }
 0xc7e   : > { %v3614_v57 = vld [vmem:[%s4582_s13] ss:$0 sm:$0xff]  ;;  %s4605_s14 = sshll.u32 %s4616_s17, 3  ;;  %s4606_s26 = sld [smem:[#allocation13_spill]] }
 0xc84   : > { %s521_s24 = scalar_lea.vmem %s4606_s26, %s4605_s14 }
 0xce5   : > { %v2464_v19 = vpop.xlane.xlu1 %2463 }
 0xce6   : > { %v2467_v40 = vmul.f32 %v2464_v19, %v4340_v61 }
 0xce8   : > { %v2469_v41 = vadd.f32 1e-12, %v2467_v40 }
 0xcea   : > { %3661 = vrsqrt.f32 %v2469_v41  ;;  %vm2477_vm10 = vweird.f32 %v2469_v41 }
 0xced   : > { %v2466_v42 = vpop.xlane.xlu2 %2465 }
 0xcee   : > { %v2468_v43 = vmul.f32 %v2466_v42, %v4340_v61 }
 0xcf0   : > { %v3662_v44 = vpop.eup %3661  ;;  %v2470_v45 = vadd.f32 1e-12, %v2468_v43 }
 0xcf1   : > { %v2472_v47 = vmul.f32 %v3662_v44, %v2469_v41  ;;  %vm2478_vm9 = vweird.f32 %v3662_v44 }
 0xcf2   : > { %3663 = vrsqrt.f32 %v2470_v45  ;;  %vm2479_vm11 = vmor %vm2477_vm10, %vm2478_vm9  ;;  %vm2487_vm13 = vweird.f32 %v2470_v45 }
 0xcf3   : > { %v2473_v48 = vmul.f32 %v3662_v44, %v2472_v47 }
 0xcf5   : > { %v2474_v49 = vmul.f32 0.5, %v2473_v48 }
 0xcf7   : > { %v2475_v51 = vsub.f32 1.5, %v2474_v49 }
 0xcf8   : > { %v3664_v52 = vpop.eup %3663 }
 0xcf9   : > { %v2476_v53 = vmul.f32 %v3662_v44, %v2475_v51  ;;  %v2482_v54 = vmul.f32 %v3664_v52, %v2470_v45  ;;  %vm2488_vm12 = vweird.f32 %v3664_v52 }
 0xcfa   : > { %vm2489_vm14 = vmor %vm2487_vm13, %vm2488_vm12 }
 0xcfb   : > { %v2480_v56 = vsel %vm2479_vm11, %v3662_v44, %v2476_v53  ;;  %v2483_v61 = vmul.f32 %v3664_v52, %v2482_v54 }
 0xcfc   : > { %v2491_v58 = vmul.f32 %v2480_v56, %v2459_v35 }
 0xcfd   : > { %v2484_v59 = vmul.f32 0.5, %v2483_v61 }
 0xcfe   : > { %v2496_v60 = vmul.f32 %v3613_v55, %v2491_v58 }
 0xcff   : > { %v2485_v62 = vsub.f32 1.5, %v2484_v59 }
 0xd00   : > { %v2501_v15 = vadd.f32 %v3614_v57, %v2496_v60 }
 0xd01   : > { %v2486_v0 = vmul.f32 %v3664_v52, %v2485_v62 }
 0xd02   : > { %2503 = vst [vmem:[%s521_s24] sm:$0xff] %v2501_v15 }
 0xd03   : > { %v2490_v16 = vsel %vm2489_vm14, %v3664_v52, %v2486_v0 }
 0xd04   : > { %v2492_v1 = vmul.f32 %v2490_v16, %v2460_v38 }
 0xd06   : > { %v2497_v3 = vmul.f32 %v3613_v55, %v2492_v1 }
 0xd08   : > { %v2502_v46 = vadd.f32 %v3614_v57, %v2497_v3 }
 0xd0a   : > { %2504 = vst [vmem:[%s521_s24 + $0x8] sm:$0xff] %v2502_v46 }
 0xd0b PF: > { %s4607_s29 = sld [smem:[#allocation7_spill]] }
 0xd0c   : > { %s4608_s30 = sld [smem:[#allocation5_spill]] }
 0xd11   : > { %p3560_p5 = scmp.ge.s32.totalorder %s4607_s29, 2 }
 0xd12   : > { %s2552_s16 = sand.u32 1, %s4608_s30  }
 0xd13   : > { %p3557_p7 = pnand %p3560_p5, %p3854_p6  ;;  %s2553_s22 = scalar_lea.sflag [#allocation3], %s2552_s16 }
 0xd15   : > { %p3558_p8 = pneg %p3557_p7 }
 0xd17   : > { %3710 = dma.done.wait (%p3558_p8), %s2553_s22, 1024  }
 0xd18   : > { %3712 = vsyncadd (%p3558_p8), %s2553_s22, 4294966272  ;;  %s4610_s21 = sld [smem:[#allocation8_spill]]  ;;  %s4613_s18 = smov %s3719_s19 }
 0xd19   : > { %s4611_s23 = sld [smem:[#allocation6_spill]] }
 0xd1a   : > { %s4612_s20 = sld [smem:[#allocation9_spill]] }
 0xd1e   : > { %p26_p9 = scmp.ge.s32.totalorder %s4610_s21, 4  }
 0xd1f   : > { %s4614_s19 = smov %s4611_s23 }
 0xd20   :  { %28 = sbr.rel (!%p26_p9) target bundleno = 7 (0x7), region = 154 }
 0xd25   :  { %2559 = vsyncpa [#allocation3], 1 }
 0xd26   :  { %2561 = vsyncpa [#allocation3 + $0x1], 1 }

</bundles_post_ra>
